<compile_context>
chip_gen: v7x
topology: tpu7x:2x2x1
jax: 0.10.0
libtpu: 0.0.40
codegen_flags: <defaults>
</compile_context>

<pallas_src>
import math

import jax
import jax.numpy as jnp
from jax.experimental import pallas as pl
from jax.experimental.pallas import tpu as pltpu

# ----------------------------- config (small) -----------------------------
B = 2            # batch
S = 16           # sequence length
H = 128          # hidden size (stand-in for 768)
NH = 2           # attention heads
DH = H // NH     # head dim
FFN = 256        # intermediate size
NLAYERS = 2      # transformer layers
VOCAB = 256
TYPE_VOCAB = 2
MAX_POS = 64
NUM_CLASSES = 4  # len(hp.PUNCTUATION_ENC)
CPAD = 128       # classifier logits padded to a full 128-lane width
LN_EPS = 1e-12
IGNORE_INDEX = -100
NEG_INF = -1e9


# --------------------------- in-kernel helpers -----------------------------
def _layernorm(x, g, b):
    mu = jnp.mean(x, axis=-1, keepdims=True)
    var = jnp.mean((x - mu) * (x - mu), axis=-1, keepdims=True)
    return (x - mu) * jax.lax.rsqrt(var + LN_EPS) * g + b


def _gelu(x):
    # TODO(synk): BERT uses exact erf-GELU; tanh approximation used here (numerically close).
    return 0.5 * x * (1.0 + jnp.tanh(0.7978845608028654 * (x + 0.044715 * x * x * x)))


# ------------------------------ fused kernel -------------------------------
def _bert_punc_kernel(
    emb_ref, bias_ref, labels_ref,
    emb_ln_g_ref, emb_ln_b_ref,
    wqkv_ref, bqkv_ref, wo_ref, bo_ref, ln1_g_ref, ln1_b_ref,
    w1_ref, b1_ref, w2_ref, b2_ref, ln2_g_ref, ln2_b_ref,
    cls_w_ref, cls_b_ref,
    logits_ref, ce_ref,
    x_ref,
):
    """One (example b, layer l) grid step of the BertPunc forward."""
    l = pl.program_id(1)
    scale = 1.0 / math.sqrt(DH)

    # embedding LayerNorm -> resident activation scratch (once per example)
    @pl.when(l == 0)
    def _():
        x_ref[...] = _layernorm(emb_ref[...], emb_ln_g_ref[...], emb_ln_b_ref[...])

    x = x_ref[...]                                                     # (S, H) f32

    # fused QKV projection: one lane-dense (H, 3H) bf16 matmul
    qkv = jnp.dot(x.astype(jnp.bfloat16), wqkv_ref[...],
                  preferred_element_type=jnp.float32) + bqkv_ref[...]  # (S, 3H) f32
    bias = bias_ref[...]                                               # (1, S) key-pad bias

    # per-head attention; contexts concatenated along lanes so the output
    # projection is a single K=128 matmul with the full (H, H) Wo.
    ctx_parts = []
    for h in range(NH):
        q = qkv[:, h * DH:(h + 1) * DH]                                # (S, DH)
        k = qkv[:, H + h * DH:H + (h + 1) * DH]                        # (S, DH)
        v = qkv[:, 2 * H + h * DH:2 * H + (h + 1) * DH]                # (S, DH)
        s = jax.lax.dot_general(q.astype(jnp.bfloat16), k.astype(jnp.bfloat16),
                                (((1,), (1,)), ((), ())),
                                preferred_element_type=jnp.float32)    # (S, S)
        s = s * scale + bias
        m = jnp.max(s, axis=-1, keepdims=True)
        p = jnp.exp(s - m)
        denom = jnp.sum(p, axis=-1, keepdims=True)
        ctx = jnp.dot(p.astype(jnp.bfloat16), v.astype(jnp.bfloat16),
                      preferred_element_type=jnp.float32)              # (S, DH)
        ctx_parts.append(ctx * pl.reciprocal(denom, approx=True))
    ctx_all = jnp.concatenate(ctx_parts, axis=1)                       # (S, H)

    attn = jnp.dot(ctx_all.astype(jnp.bfloat16), wo_ref[...],
                   preferred_element_type=jnp.float32) + bo_ref[...]   # (S, H)

    # bias + residual + LayerNorm (fused)
    x = _layernorm(x + attn, ln1_g_ref[...], ln1_b_ref[...])

    # FFN (GELU) + residual + LayerNorm
    ffn = _gelu(jnp.dot(x.astype(jnp.bfloat16), w1_ref[...],
                        preferred_element_type=jnp.float32) + b1_ref[...])
    ffn = jnp.dot(ffn.astype(jnp.bfloat16), w2_ref[...],
                  preferred_element_type=jnp.float32) + b2_ref[...]
    x = _layernorm(x + ffn, ln2_g_ref[...], ln2_b_ref[...])
    x_ref[...] = x

    # classifier + per-token masked CE on the final layer iteration only
    @pl.when(l == NLAYERS - 1)
    def _():
        # TODO(synk): training-mode dropout (nn.Dropout) not implemented; identity at inference.
        # classifier padded to CPAD=128 lanes (lane-dense store); padded
        # columns carry a -1e9 bias so they never affect the CE below.
        logits = jnp.dot(x.astype(jnp.bfloat16), cls_w_ref[...],
                         preferred_element_type=jnp.float32) + cls_b_ref[...]  # (S, CPAD) f32
        logits_ref[...] = logits

        # PyTorch CrossEntropyLoss(ignore_index=-100) semantics per token.
        labels = labels_ref[...]                                       # (S, 1) int32
        valid = (labels != IGNORE_INDEX).astype(jnp.float32)           # (S, 1)
        m = jnp.max(logits, axis=-1, keepdims=True)
        lse = jnp.log(jnp.sum(jnp.exp(logits - m), axis=-1, keepdims=True)) + m
        cls_idx = jax.lax.broadcasted_iota(jnp.int32, logits.shape, 1)
        picked = jnp.sum(jnp.where(cls_idx == labels, logits, 0.0), axis=-1, keepdims=True)
        ce_ref[...] = (lse - picked) * valid                           # (S, 1)


def _fused_forward(emb, attn_bias, labels, p):
    per_b3 = lambda b, l: (b, 0, 0)     # per-example blocks
    per_l3 = lambda b, l: (l, 0, 0)     # per-layer (pipelined) weight blocks
    fixed2 = lambda b, l: (0, 0)        # shared, resident blocks

    in_specs = [
        pl.BlockSpec((None, S, H), per_b3),          # emb
        pl.BlockSpec((None, 1, S), per_b3),          # attn_bias (key padding)
        pl.BlockSpec((None, S, 1), per_b3),          # labels (int32, -100 = ignore)
        pl.BlockSpec((1, H), fixed2),                # emb_ln_g
        pl.BlockSpec((1, H), fixed2),                # emb_ln_b
        pl.BlockSpec((None, H, 3 * H), per_l3),      # wqkv (bf16)
        pl.BlockSpec((None, 1, 3 * H), per_l3),      # bqkv
        pl.BlockSpec((None, H, H), per_l3),          # wo (bf16)
        pl.BlockSpec((None, 1, H), per_l3),          # bo
        pl.BlockSpec((None, 1, H), per_l3),          # ln1_g
        pl.BlockSpec((None, 1, H), per_l3),          # ln1_b
        pl.BlockSpec((None, H, FFN), per_l3),        # w1 (bf16)
        pl.BlockSpec((None, 1, FFN), per_l3),        # b1
        pl.BlockSpec((None, FFN, H), per_l3),        # w2 (bf16)
        pl.BlockSpec((None, 1, H), per_l3),          # b2
        pl.BlockSpec((None, 1, H), per_l3),          # ln2_g
        pl.BlockSpec((None, 1, H), per_l3),          # ln2_b
        pl.BlockSpec((H, CPAD), fixed2),             # cls_w (bf16, padded)
        pl.BlockSpec((1, CPAD), fixed2),             # cls_b (padded with -1e9)
    ]
    out_specs = [
        pl.BlockSpec((None, S, CPAD), per_b3),       # padded logits
        pl.BlockSpec((None, S, 1), per_b3),          # per-token masked CE
    ]
    return pl.pallas_call(
        _bert_punc_kernel,
        out_shape=(jax.ShapeDtypeStruct((B, S, CPAD), jnp.float32),
                   jax.ShapeDtypeStruct((B, S, 1), jnp.float32)),
        grid_spec=pltpu.PrefetchScalarGridSpec(
            num_scalar_prefetch=0,
            grid=(B, NLAYERS),
            in_specs=in_specs,
            out_specs=out_specs,
            scratch_shapes=[pltpu.VMEM((S, H), jnp.float32)],   # resident activation
        ),
        compiler_params=pltpu.CompilerParams(
            dimension_semantics=("parallel", "arbitrary")),
    )(emb, attn_bias, labels,
      p["emb_ln_g"], p["emb_ln_b"],
      p["wqkv"], p["bqkv"], p["wo"], p["bo"], p["ln1_g"], p["ln1_b"],
      p["w1"], p["b1"], p["w2"], p["b2"], p["ln2_g"], p["ln2_b"],
      p["cls_w"], p["cls_b"])


# --------------------------- parameter construction ------------------------
def init_params(key):
    def nrm(k, shape):
        return (0.02 * jax.random.normal(k, shape)).astype(jnp.float32)

    keys = iter(jax.random.split(key, 3 + NLAYERS * 6 + 1))
    p = {
        "word_emb": nrm(next(keys), (VOCAB, H)),
        "pos_emb": nrm(next(keys), (MAX_POS, H)),
        "type_emb": nrm(next(keys), (TYPE_VOCAB, H)),
        "emb_ln_g": jnp.ones((1, H), jnp.float32),
        "emb_ln_b": jnp.zeros((1, H), jnp.float32),
    }
    wqkv, wo, w1, w2 = [], [], [], []
    for _ in range(NLAYERS):
        wq = nrm(next(keys), (H, H))
        wk = nrm(next(keys), (H, H))
        wv = nrm(next(keys), (H, H))
        wqkv.append(jnp.concatenate([wq, wk, wv], axis=1))             # (H, 3H)
        wo.append(nrm(next(keys), (H, H)))                             # rows = concat'd head dims
        w1.append(nrm(next(keys), (H, FFN)))
        w2.append(nrm(next(keys), (FFN, H)))
    # MXU operands stored in bf16; elementwise (bias/LN) params stay f32.
    p["wqkv"] = jnp.stack(wqkv).astype(jnp.bfloat16)                   # (L, H, 3H)
    p["bqkv"] = jnp.zeros((NLAYERS, 1, 3 * H), jnp.float32)
    p["wo"] = jnp.stack(wo).astype(jnp.bfloat16)                       # (L, H, H)
    p["bo"] = jnp.zeros((NLAYERS, 1, H), jnp.float32)
    p["ln1_g"] = jnp.ones((NLAYERS, 1, H), jnp.float32)
    p["ln1_b"] = jnp.zeros((NLAYERS, 1, H), jnp.float32)
    p["w1"] = jnp.stack(w1).astype(jnp.bfloat16)                       # (L, H, FFN)
    p["b1"] = jnp.zeros((NLAYERS, 1, FFN), jnp.float32)
    p["w2"] = jnp.stack(w2).astype(jnp.bfloat16)                       # (L, FFN, H)
    p["b2"] = jnp.zeros((NLAYERS, 1, H), jnp.float32)
    p["ln2_g"] = jnp.ones((NLAYERS, 1, H), jnp.float32)
    p["ln2_b"] = jnp.zeros((NLAYERS, 1, H), jnp.float32)
    cls_w = nrm(next(keys), (H, NUM_CLASSES))
    p["cls_w"] = jnp.concatenate(
        [cls_w, jnp.zeros((H, CPAD - NUM_CLASSES), jnp.float32)],
        axis=1).astype(jnp.bfloat16)                                   # (H, CPAD)
    p["cls_b"] = jnp.concatenate(
        [jnp.zeros((1, NUM_CLASSES), jnp.float32),
         jnp.full((1, CPAD - NUM_CLASSES), NEG_INF, jnp.float32)], axis=1)  # (1, CPAD)
    return p


# ------------------------------ forward pass -------------------------------
def bert_punc_forward(params, ids, mask, token_type_ids, target_label=None):
    # embeddings (gathers are cheap XLA glue; the LayerNorm is fused into the kernel)
    pos = jnp.arange(S, dtype=jnp.int32)[None, :]
    emb = (jnp.take(params["word_emb"], ids, axis=0)
           + jnp.take(params["pos_emb"], pos, axis=0)
           + jnp.take(params["type_emb"], token_type_ids, axis=0))     # (B, S, H)
    emb = emb.astype(jnp.float32)

    # per-example key-padding additive bias, broadcast over queries/heads in-kernel
    attn_bias = jnp.where(mask == 1, 0.0, NEG_INF).astype(jnp.float32).reshape(B, 1, S)

    # PyTorch loss_fn semantics: labels -> -100 where mask==0, then ignore_index=-100
    tgt = (target_label if target_label is not None
           else jnp.zeros((B, S), jnp.int32)).astype(jnp.int32)
    active_labels = jnp.where(mask == 1, tgt, IGNORE_INDEX).reshape(B, S, 1)

    logits_pad, ce = _fused_forward(emb, attn_bias, active_labels, params)

    labels_out = logits_pad[:, :, :NUM_CLASSES]                        # (B, S, NUM_CLASSES)
    if target_label is not None:
        count = jnp.sum((mask == 1).astype(jnp.float32))
        # guard against 0/0 (PyTorch would return NaN when every token is ignored)
        loss = jnp.sum(ce) / jnp.maximum(count, 1.0)
        return labels_out, loss
    return labels_out


# ----------------------------------- main -----------------------------------
if __name__ == "__main__":
    key = jax.random.PRNGKey(0)
    kp, kid, klab = jax.random.split(key, 3)

    params = init_params(kp)

    ids = jax.random.randint(kid, (B, S), 0, VOCAB, dtype=jnp.int32)
    mask = jnp.ones((B, S), dtype=jnp.int32).at[:, -3:].set(0)   # last 3 tokens padded
    token_type_ids = jnp.zeros((B, S), dtype=jnp.int32)
    target_label = jax.random.randint(klab, (B, S), 0, NUM_CLASSES, dtype=jnp.int32)

    fwd = jax.jit(bert_punc_forward)
    labels, loss = fwd(params, ids, mask, token_type_ids, target_label)
    labels = jax.block_until_ready(labels)
    loss = jax.block_until_ready(loss)

    assert labels.shape == (B, S, NUM_CLASSES)
    assert labels.dtype == jnp.float32
    assert loss.shape == ()
    assert bool(jnp.isfinite(loss))

    print("KERNEL_OK")
</pallas_src>

<mosaic_0001>
module attributes {stable_mosaic.version = 11 : i64} {
  func.func @_bert_punc_kernel(%arg0: i32, %arg1: i32, %arg2: memref<1x16x128xf32, #tpu.memory_space<vmem>>, %arg3: memref<1x1x16xf32, #tpu.memory_space<vmem>>, %arg4: memref<1x16x1xi32, #tpu.memory_space<vmem>>, %arg5: memref<1x128xf32, #tpu.memory_space<vmem>>, %arg6: memref<1x128xf32, #tpu.memory_space<vmem>>, %arg7: memref<1x128x384xbf16, #tpu.memory_space<vmem>>, %arg8: memref<1x1x384xf32, #tpu.memory_space<vmem>>, %arg9: memref<1x128x128xbf16, #tpu.memory_space<vmem>>, %arg10: memref<1x1x128xf32, #tpu.memory_space<vmem>>, %arg11: memref<1x1x128xf32, #tpu.memory_space<vmem>>, %arg12: memref<1x1x128xf32, #tpu.memory_space<vmem>>, %arg13: memref<1x128x256xbf16, #tpu.memory_space<vmem>>, %arg14: memref<1x1x256xf32, #tpu.memory_space<vmem>>, %arg15: memref<1x256x128xbf16, #tpu.memory_space<vmem>>, %arg16: memref<1x1x128xf32, #tpu.memory_space<vmem>>, %arg17: memref<1x1x128xf32, #tpu.memory_space<vmem>>, %arg18: memref<1x1x128xf32, #tpu.memory_space<vmem>>, %arg19: memref<128x128xbf16, #tpu.memory_space<vmem>>, %arg20: memref<1x128xf32, #tpu.memory_space<vmem>>, %arg21: memref<1x16x128xf32, #tpu.memory_space<vmem>>, %arg22: memref<1x16x1xf32, #tpu.memory_space<vmem>>, %arg23: memref<16x128xf32, #tpu.memory_space<vmem>>) attributes {dimension_semantics = [#tpu.dimension_semantics<parallel>, #tpu.dimension_semantics<arbitrary>], iteration_bounds = array<i64: 2, 2>, scalar_prefetch = 0 : i64, scratch_operands = 1 : i64, tpu.core_type = #tpu.core_type<tc>, window_params = [{transform_indices = @transform_0, window_bounds = array<i64: 1, 16, 128>}, {transform_indices = @transform_1, window_bounds = array<i64: 1, 1, 16>}, {transform_indices = @transform_2, window_bounds = array<i64: 1, 16, 1>}, {pipeline_mode = #tpu.pipeline_mode<synchronous>, transform_indices = @transform_3, window_bounds = array<i64: 1, 128>}, {pipeline_mode = #tpu.pipeline_mode<synchronous>, transform_indices = @transform_4, window_bounds = array<i64: 1, 128>}, {transform_indices = @transform_5, window_bounds = array<i64: 1, 128, 384>}, {transform_indices = @transform_6, window_bounds = array<i64: 1, 1, 384>}, {transform_indices = @transform_7, window_bounds = array<i64: 1, 128, 128>}, {transform_indices = @transform_8, window_bounds = array<i64: 1, 1, 128>}, {transform_indices = @transform_9, window_bounds = array<i64: 1, 1, 128>}, {transform_indices = @transform_10, window_bounds = array<i64: 1, 1, 128>}, {transform_indices = @transform_11, window_bounds = array<i64: 1, 128, 256>}, {transform_indices = @transform_12, window_bounds = array<i64: 1, 1, 256>}, {transform_indices = @transform_13, window_bounds = array<i64: 1, 256, 128>}, {transform_indices = @transform_14, window_bounds = array<i64: 1, 1, 128>}, {transform_indices = @transform_15, window_bounds = array<i64: 1, 1, 128>}, {transform_indices = @transform_16, window_bounds = array<i64: 1, 1, 128>}, {pipeline_mode = #tpu.pipeline_mode<synchronous>, transform_indices = @transform_17, window_bounds = array<i64: 128, 128>}, {pipeline_mode = #tpu.pipeline_mode<synchronous>, transform_indices = @transform_18, window_bounds = array<i64: 1, 128>}, {transform_indices = @transform_19, window_bounds = array<i64: 1, 16, 128>}, {transform_indices = @transform_20, window_bounds = array<i64: 1, 16, 1>}]} {
    %c0_i32 = arith.constant 0 : i32
    %0 = arith.cmpi eq, %arg1, %c0_i32 : i32
    %1 = arith.extui %0 : i1 to i32
    %c0_i32_0 = arith.constant 0 : i32
    %2 = arith.cmpi ne, %1, %c0_i32_0 : i32
    scf.if %2 {
      %c0_71 = arith.constant 0 : index
      %c0_72 = arith.constant 0 : index
      %c0_73 = arith.constant 0 : index
      %160 = vector.load %arg2[%c0_71, %c0_72, %c0_73] : memref<1x16x128xf32, #tpu.memory_space<vmem>>, vector<1x16x128xf32>
      %161 = vector.shape_cast %160 : vector<1x16x128xf32> to vector<16x128xf32>
      %c0_74 = arith.constant 0 : index
      %c0_75 = arith.constant 0 : index
      %162 = vector.load %arg5[%c0_74, %c0_75] : memref<1x128xf32, #tpu.memory_space<vmem>>, vector<1x128xf32>
      %c0_76 = arith.constant 0 : index
      %c0_77 = arith.constant 0 : index
      %163 = vector.load %arg6[%c0_76, %c0_77] : memref<1x128xf32, #tpu.memory_space<vmem>>, vector<1x128xf32>
      %cst_78 = arith.constant dense<0.000000e+00> : vector<16xf32>
      %164 = vector.multi_reduction <add>, %161, %cst_78 [1] : vector<16x128xf32> to vector<16xf32>
      %165 = vector.shape_cast %164 : vector<16xf32> to vector<16x1xf32>
      %cst_79 = arith.constant 1.280000e+02 : f32
      %166 = vector.broadcast %cst_79 : f32 to vector<16x1xf32>
      %167 = arith.divf %165, %166 : vector<16x1xf32>
      %168 = vector.broadcast %167 : vector<16x1xf32> to vector<16x128xf32>
      %169 = arith.subf %161, %168 : vector<16x128xf32>
      %170 = vector.broadcast %167 : vector<16x1xf32> to vector<16x128xf32>
      %171 = arith.subf %161, %170 : vector<16x128xf32>
      %172 = arith.mulf %169, %171 : vector<16x128xf32>
      %cst_80 = arith.constant dense<0.000000e+00> : vector<16xf32>
      %173 = vector.multi_reduction <add>, %172, %cst_80 [1] : vector<16x128xf32> to vector<16xf32>
      %174 = vector.shape_cast %173 : vector<16xf32> to vector<16x1xf32>
      %cst_81 = arith.constant 1.280000e+02 : f32
      %175 = vector.broadcast %cst_81 : f32 to vector<16x1xf32>
      %176 = arith.divf %174, %175 : vector<16x1xf32>
      %177 = vector.broadcast %167 : vector<16x1xf32> to vector<16x128xf32>
      %178 = arith.subf %161, %177 : vector<16x128xf32>
      %cst_82 = arith.constant 9.99999996E-13 : f32
      %179 = vector.broadcast %cst_82 : f32 to vector<16x1xf32>
      %180 = arith.addf %176, %179 : vector<16x1xf32>
      %181 = math.rsqrt %180 : vector<16x1xf32>
      %182 = vector.broadcast %181 : vector<16x1xf32> to vector<16x128xf32>
      %183 = arith.mulf %178, %182 : vector<16x128xf32>
      %184 = vector.broadcast %162 : vector<1x128xf32> to vector<16x128xf32>
      %185 = arith.mulf %183, %184 : vector<16x128xf32>
      %186 = vector.broadcast %163 : vector<1x128xf32> to vector<16x128xf32>
      %187 = arith.addf %185, %186 : vector<16x128xf32>
      %c0_83 = arith.constant 0 : index
      %c0_84 = arith.constant 0 : index
      %188 = vector.load %arg23[%c0_83, %c0_84] : memref<16x128xf32, #tpu.memory_space<vmem>>, vector<16x128xf32>
      tpu.vector_store %arg23[%c0_83, %c0_84], %187 {strides = array<i32>} : memref<16x128xf32, #tpu.memory_space<vmem>>, vector<16x128xf32>,
    } else {
    }
    %c0 = arith.constant 0 : index
    %c0_1 = arith.constant 0 : index
    %3 = vector.load %arg23[%c0, %c0_1] : memref<16x128xf32, #tpu.memory_space<vmem>>, vector<16x128xf32>
    %4 = arith.truncf %3 : vector<16x128xf32> to vector<16x128xbf16>
    %c0_2 = arith.constant 0 : index
    %c0_3 = arith.constant 0 : index
    %c0_4 = arith.constant 0 : index
    %5 = vector.load %arg7[%c0_2, %c0_3, %c0_4] : memref<1x128x384xbf16, #tpu.memory_space<vmem>>, vector<1x128x384xbf16>
    %6 = vector.shape_cast %5 : vector<1x128x384xbf16> to vector<128x384xbf16>
    %cst = arith.constant dense<0.000000e+00> : vector<16x384xf32>
    %7 = tpu.matmul %4, %6, %cst {dimension_numbers = #tpu.dot_dimension_numbers<[1], [0], [0], [1], [0, 0, 1, 1], [], []>} : vector<16x128xbf16>, vector<128x384xbf16>, vector<16x384xf32> -> vector<16x384xf32>
    %c0_5 = arith.constant 0 : index
    %c0_6 = arith.constant 0 : index
    %c0_7 = arith.constant 0 : index
    %8 = vector.load %arg8[%c0_5, %c0_6, %c0_7] : memref<1x1x384xf32, #tpu.memory_space<vmem>>, vector<1x1x384xf32>
    %9 = vector.shape_cast %8 : vector<1x1x384xf32> to vector<1x384xf32>
    %10 = vector.broadcast %9 : vector<1x384xf32> to vector<16x384xf32>
    %11 = arith.addf %7, %10 : vector<16x384xf32>
    %c0_8 = arith.constant 0 : index
    %c0_9 = arith.constant 0 : index
    %c0_10 = arith.constant 0 : index
    %12 = vector.load %arg3[%c0_8, %c0_9, %c0_10] : memref<1x1x16xf32, #tpu.memory_space<vmem>>, vector<1x1x16xf32>
    %13 = vector.shape_cast %12 : vector<1x1x16xf32> to vector<1x16xf32>
    %14 = vector.extract_strided_slice %11 {offsets = [0, 0], sizes = [16, 64], strides = [1, 1]} : vector<16x384xf32> to vector<16x64xf32>
    %15 = vector.extract_strided_slice %11 {offsets = [0, 128], sizes = [16, 64], strides = [1, 1]} : vector<16x384xf32> to vector<16x64xf32>
    %16 = vector.extract_strided_slice %11 {offsets = [0, 256], sizes = [16, 64], strides = [1, 1]} : vector<16x384xf32> to vector<16x64xf32>
    %17 = arith.truncf %14 : vector<16x64xf32> to vector<16x64xbf16>
    %18 = arith.truncf %15 : vector<16x64xf32> to vector<16x64xbf16>
    %cst_11 = arith.constant dense<0.000000e+00> : vector<16x16xf32>
    %19 = tpu.matmul %17, %18, %cst_11 {dimension_numbers = #tpu.dot_dimension_numbers<[1], [1], [0], [0], [0, 0, 1, 0], [], []>} : vector<16x64xbf16>, vector<16x64xbf16>, vector<16x16xf32> -> vector<16x16xf32>
    %cst_12 = arith.constant 1.250000e-01 : f32
    %20 = vector.broadcast %cst_12 : f32 to vector<16x16xf32>
    %21 = arith.mulf %19, %20 : vector<16x16xf32>
    %22 = vector.broadcast %13 : vector<1x16xf32> to vector<16x16xf32>
    %23 = arith.addf %21, %22 : vector<16x16xf32>
    %cst_13 = arith.constant dense<0xFF800000> : vector<16xf32>
    %24 = vector.multi_reduction <maximumf>, %23, %cst_13 [1] : vector<16x16xf32> to vector<16xf32>
    %25 = vector.shape_cast %24 : vector<16xf32> to vector<16x1xf32>
    %26 = vector.broadcast %25 : vector<16x1xf32> to vector<16x16xf32>
    %27 = arith.subf %23, %26 : vector<16x16xf32>
    %28 = math.exp %27 : vector<16x16xf32>
    %cst_14 = arith.constant dense<0.000000e+00> : vector<16xf32>
    %29 = vector.multi_reduction <add>, %28, %cst_14 [1] : vector<16x16xf32> to vector<16xf32>
    %30 = vector.shape_cast %29 : vector<16xf32> to vector<16x1xf32>
    %31 = arith.truncf %28 : vector<16x16xf32> to vector<16x16xbf16>
    %32 = arith.truncf %16 : vector<16x64xf32> to vector<16x64xbf16>
    %cst_15 = arith.constant dense<0.000000e+00> : vector<16x64xf32>
    %33 = tpu.matmul %31, %32, %cst_15 {dimension_numbers = #tpu.dot_dimension_numbers<[1], [0], [0], [1], [0, 0, 1, 1], [], []>} : vector<16x16xbf16>, vector<16x64xbf16>, vector<16x64xf32> -> vector<16x64xf32>
    %34 = tpu.reciprocal %30 {approx = true} : vector<16x1xf32> -> vector<16x1xf32>
    %35 = vector.broadcast %34 : vector<16x1xf32> to vector<16x64xf32>
    %36 = arith.mulf %33, %35 : vector<16x64xf32>
    %37 = vector.extract_strided_slice %11 {offsets = [0, 64], sizes = [16, 64], strides = [1, 1]} : vector<16x384xf32> to vector<16x64xf32>
    %38 = vector.extract_strided_slice %11 {offsets = [0, 192], sizes = [16, 64], strides = [1, 1]} : vector<16x384xf32> to vector<16x64xf32>
    %39 = vector.extract_strided_slice %11 {offsets = [0, 320], sizes = [16, 64], strides = [1, 1]} : vector<16x384xf32> to vector<16x64xf32>
    %40 = arith.truncf %37 : vector<16x64xf32> to vector<16x64xbf16>
    %41 = arith.truncf %38 : vector<16x64xf32> to vector<16x64xbf16>
    %cst_16 = arith.constant dense<0.000000e+00> : vector<16x16xf32>
    %42 = tpu.matmul %40, %41, %cst_16 {dimension_numbers = #tpu.dot_dimension_numbers<[1], [1], [0], [0], [0, 0, 1, 0], [], []>} : vector<16x64xbf16>, vector<16x64xbf16>, vector<16x16xf32> -> vector<16x16xf32>
    %cst_17 = arith.constant 1.250000e-01 : f32
    %43 = vector.broadcast %cst_17 : f32 to vector<16x16xf32>
    %44 = arith.mulf %42, %43 : vector<16x16xf32>
    %45 = vector.broadcast %13 : vector<1x16xf32> to vector<16x16xf32>
    %46 = arith.addf %44, %45 : vector<16x16xf32>
    %cst_18 = arith.constant dense<0xFF800000> : vector<16xf32>
    %47 = vector.multi_reduction <maximumf>, %46, %cst_18 [1] : vector<16x16xf32> to vector<16xf32>
    %48 = vector.shape_cast %47 : vector<16xf32> to vector<16x1xf32>
    %49 = vector.broadcast %48 : vector<16x1xf32> to vector<16x16xf32>
    %50 = arith.subf %46, %49 : vector<16x16xf32>
    %51 = math.exp %50 : vector<16x16xf32>
    %cst_19 = arith.constant dense<0.000000e+00> : vector<16xf32>
    %52 = vector.multi_reduction <add>, %51, %cst_19 [1] : vector<16x16xf32> to vector<16xf32>
    %53 = vector.shape_cast %52 : vector<16xf32> to vector<16x1xf32>
    %54 = arith.truncf %51 : vector<16x16xf32> to vector<16x16xbf16>
    %55 = arith.truncf %39 : vector<16x64xf32> to vector<16x64xbf16>
    %cst_20 = arith.constant dense<0.000000e+00> : vector<16x64xf32>
    %56 = tpu.matmul %54, %55, %cst_20 {dimension_numbers = #tpu.dot_dimension_numbers<[1], [0], [0], [1], [0, 0, 1, 1], [], []>} : vector<16x16xbf16>, vector<16x64xbf16>, vector<16x64xf32> -> vector<16x64xf32>
    %57 = tpu.reciprocal %53 {approx = true} : vector<16x1xf32> -> vector<16x1xf32>
    %58 = vector.broadcast %57 : vector<16x1xf32> to vector<16x64xf32>
    %59 = arith.mulf %56, %58 : vector<16x64xf32>
    %60 = tpu.concatenate %36, %59 in 1 : vector<16x64xf32>, vector<16x64xf32> -> vector<16x128xf32>
    %61 = arith.truncf %60 : vector<16x128xf32> to vector<16x128xbf16>
    %c0_21 = arith.constant 0 : index
    %c0_22 = arith.constant 0 : index
    %c0_23 = arith.constant 0 : index
    %62 = vector.load %arg9[%c0_21, %c0_22, %c0_23] : memref<1x128x128xbf16, #tpu.memory_space<vmem>>, vector<1x128x128xbf16>
    %63 = vector.shape_cast %62 : vector<1x128x128xbf16> to vector<128x128xbf16>
    %cst_24 = arith.constant dense<0.000000e+00> : vector<16x128xf32>
    %64 = tpu.matmul %61, %63, %cst_24 {dimension_numbers = #tpu.dot_dimension_numbers<[1], [0], [0], [1], [0, 0, 1, 1], [], []>} : vector<16x128xbf16>, vector<128x128xbf16>, vector<16x128xf32> -> vector<16x128xf32>
    %c0_25 = arith.constant 0 : index
    %c0_26 = arith.constant 0 : index
    %c0_27 = arith.constant 0 : index
    %65 = vector.load %arg10[%c0_25, %c0_26, %c0_27] : memref<1x1x128xf32, #tpu.memory_space<vmem>>, vector<1x1x128xf32>
    %66 = vector.shape_cast %65 : vector<1x1x128xf32> to vector<1x128xf32>
    %67 = vector.broadcast %66 : vector<1x128xf32> to vector<16x128xf32>
    %68 = arith.addf %64, %67 : vector<16x128xf32>
    %69 = arith.addf %3, %68 : vector<16x128xf32>
    %c0_28 = arith.constant 0 : index
    %c0_29 = arith.constant 0 : index
    %c0_30 = arith.constant 0 : index
    %70 = vector.load %arg11[%c0_28, %c0_29, %c0_30] : memref<1x1x128xf32, #tpu.memory_space<vmem>>, vector<1x1x128xf32>
    %71 = vector.shape_cast %70 : vector<1x1x128xf32> to vector<1x128xf32>
    %c0_31 = arith.constant 0 : index
    %c0_32 = arith.constant 0 : index
    %c0_33 = arith.constant 0 : index
    %72 = vector.load %arg12[%c0_31, %c0_32, %c0_33] : memref<1x1x128xf32, #tpu.memory_space<vmem>>, vector<1x1x128xf32>
    %73 = vector.shape_cast %72 : vector<1x1x128xf32> to vector<1x128xf32>
    %cst_34 = arith.constant dense<0.000000e+00> : vector<16xf32>
    %74 = vector.multi_reduction <add>, %69, %cst_34 [1] : vector<16x128xf32> to vector<16xf32>
    %75 = vector.shape_cast %74 : vector<16xf32> to vector<16x1xf32>
    %cst_35 = arith.constant 1.280000e+02 : f32
    %76 = vector.broadcast %cst_35 : f32 to vector<16x1xf32>
    %77 = arith.divf %75, %76 : vector<16x1xf32>
    %78 = vector.broadcast %77 : vector<16x1xf32> to vector<16x128xf32>
    %79 = arith.subf %69, %78 : vector<16x128xf32>
    %80 = vector.broadcast %77 : vector<16x1xf32> to vector<16x128xf32>
    %81 = arith.subf %69, %80 : vector<16x128xf32>
    %82 = arith.mulf %79, %81 : vector<16x128xf32>
    %cst_36 = arith.constant dense<0.000000e+00> : vector<16xf32>
    %83 = vector.multi_reduction <add>, %82, %cst_36 [1] : vector<16x128xf32> to vector<16xf32>
    %84 = vector.shape_cast %83 : vector<16xf32> to vector<16x1xf32>
    %cst_37 = arith.constant 1.280000e+02 : f32
    %85 = vector.broadcast %cst_37 : f32 to vector<16x1xf32>
    %86 = arith.divf %84, %85 : vector<16x1xf32>
    %87 = vector.broadcast %77 : vector<16x1xf32> to vector<16x128xf32>
    %88 = arith.subf %69, %87 : vector<16x128xf32>
    %cst_38 = arith.constant 9.99999996E-13 : f32
    %89 = vector.broadcast %cst_38 : f32 to vector<16x1xf32>
    %90 = arith.addf %86, %89 : vector<16x1xf32>
    %91 = math.rsqrt %90 : vector<16x1xf32>
    %92 = vector.broadcast %91 : vector<16x1xf32> to vector<16x128xf32>
    %93 = arith.mulf %88, %92 : vector<16x128xf32>
    %94 = vector.broadcast %71 : vector<1x128xf32> to vector<16x128xf32>
    %95 = arith.mulf %93, %94 : vector<16x128xf32>
    %96 = vector.broadcast %73 : vector<1x128xf32> to vector<16x128xf32>
    %97 = arith.addf %95, %96 : vector<16x128xf32>
    %98 = arith.truncf %97 : vector<16x128xf32> to vector<16x128xbf16>
    %c0_39 = arith.constant 0 : index
    %c0_40 = arith.constant 0 : index
    %c0_41 = arith.constant 0 : index
    %99 = vector.load %arg13[%c0_39, %c0_40, %c0_41] : memref<1x128x256xbf16, #tpu.memory_space<vmem>>, vector<1x128x256xbf16>
    %100 = vector.shape_cast %99 : vector<1x128x256xbf16> to vector<128x256xbf16>
    %cst_42 = arith.constant dense<0.000000e+00> : vector<16x256xf32>
    %101 = tpu.matmul %98, %100, %cst_42 {dimension_numbers = #tpu.dot_dimension_numbers<[1], [0], [0], [1], [0, 0, 1, 1], [], []>} : vector<16x128xbf16>, vector<128x256xbf16>, vector<16x256xf32> -> vector<16x256xf32>
    %c0_43 = arith.constant 0 : index
    %c0_44 = arith.constant 0 : index
    %c0_45 = arith.constant 0 : index
    %102 = vector.load %arg14[%c0_43, %c0_44, %c0_45] : memref<1x1x256xf32, #tpu.memory_space<vmem>>, vector<1x1x256xf32>
    %103 = vector.shape_cast %102 : vector<1x1x256xf32> to vector<1x256xf32>
    %104 = vector.broadcast %103 : vector<1x256xf32> to vector<16x256xf32>
    %105 = arith.addf %101, %104 : vector<16x256xf32>
    %cst_46 = arith.constant 5.000000e-01 : f32
    %106 = vector.broadcast %cst_46 : f32 to vector<16x256xf32>
    %107 = arith.mulf %106, %105 : vector<16x256xf32>
    %cst_47 = arith.constant 4.471500e-02 : f32
    %108 = vector.broadcast %cst_47 : f32 to vector<16x256xf32>
    %109 = arith.mulf %108, %105 : vector<16x256xf32>
    %110 = arith.mulf %109, %105 : vector<16x256xf32>
    %111 = arith.mulf %110, %105 : vector<16x256xf32>
    %112 = arith.addf %105, %111 : vector<16x256xf32>
    %cst_48 = arith.constant 0.797884583 : f32
    %113 = vector.broadcast %cst_48 : f32 to vector<16x256xf32>
    %114 = arith.mulf %113, %112 : vector<16x256xf32>
    %115 = math.tanh %114 : vector<16x256xf32>
    %cst_49 = arith.constant 1.000000e+00 : f32
    %116 = vector.broadcast %cst_49 : f32 to vector<16x256xf32>
    %117 = arith.addf %116, %115 : vector<16x256xf32>
    %118 = arith.mulf %107, %117 : vector<16x256xf32>
    %119 = arith.truncf %118 : vector<16x256xf32> to vector<16x256xbf16>
    %c0_50 = arith.constant 0 : index
    %c0_51 = arith.constant 0 : index
    %c0_52 = arith.constant 0 : index
    %120 = vector.load %arg15[%c0_50, %c0_51, %c0_52] : memref<1x256x128xbf16, #tpu.memory_space<vmem>>, vector<1x256x128xbf16>
    %121 = vector.shape_cast %120 : vector<1x256x128xbf16> to vector<256x128xbf16>
    %cst_53 = arith.constant dense<0.000000e+00> : vector<16x128xf32>
    %122 = tpu.matmul %119, %121, %cst_53 {dimension_numbers = #tpu.dot_dimension_numbers<[1], [0], [0], [1], [0, 0, 1, 1], [], []>} : vector<16x256xbf16>, vector<256x128xbf16>, vector<16x128xf32> -> vector<16x128xf32>
    %c0_54 = arith.constant 0 : index
    %c0_55 = arith.constant 0 : index
    %c0_56 = arith.constant 0 : index
    %123 = vector.load %arg16[%c0_54, %c0_55, %c0_56] : memref<1x1x128xf32, #tpu.memory_space<vmem>>, vector<1x1x128xf32>
    %124 = vector.shape_cast %123 : vector<1x1x128xf32> to vector<1x128xf32>
    %125 = vector.broadcast %124 : vector<1x128xf32> to vector<16x128xf32>
    %126 = arith.addf %122, %125 : vector<16x128xf32>
    %127 = arith.addf %97, %126 : vector<16x128xf32>
    %c0_57 = arith.constant 0 : index
    %c0_58 = arith.constant 0 : index
    %c0_59 = arith.constant 0 : index
    %128 = vector.load %arg17[%c0_57, %c0_58, %c0_59] : memref<1x1x128xf32, #tpu.memory_space<vmem>>, vector<1x1x128xf32>
    %129 = vector.shape_cast %128 : vector<1x1x128xf32> to vector<1x128xf32>
    %c0_60 = arith.constant 0 : index
    %c0_61 = arith.constant 0 : index
    %c0_62 = arith.constant 0 : index
    %130 = vector.load %arg18[%c0_60, %c0_61, %c0_62] : memref<1x1x128xf32, #tpu.memory_space<vmem>>, vector<1x1x128xf32>
    %131 = vector.shape_cast %130 : vector<1x1x128xf32> to vector<1x128xf32>
    %cst_63 = arith.constant dense<0.000000e+00> : vector<16xf32>
    %132 = vector.multi_reduction <add>, %127, %cst_63 [1] : vector<16x128xf32> to vector<16xf32>
    %133 = vector.shape_cast %132 : vector<16xf32> to vector<16x1xf32>
    %cst_64 = arith.constant 1.280000e+02 : f32
    %134 = vector.broadcast %cst_64 : f32 to vector<16x1xf32>
    %135 = arith.divf %133, %134 : vector<16x1xf32>
    %136 = vector.broadcast %135 : vector<16x1xf32> to vector<16x128xf32>
    %137 = arith.subf %127, %136 : vector<16x128xf32>
    %138 = vector.broadcast %135 : vector<16x1xf32> to vector<16x128xf32>
    %139 = arith.subf %127, %138 : vector<16x128xf32>
    %140 = arith.mulf %137, %139 : vector<16x128xf32>
    %cst_65 = arith.constant dense<0.000000e+00> : vector<16xf32>
    %141 = vector.multi_reduction <add>, %140, %cst_65 [1] : vector<16x128xf32> to vector<16xf32>
    %142 = vector.shape_cast %141 : vector<16xf32> to vector<16x1xf32>
    %cst_66 = arith.constant 1.280000e+02 : f32
    %143 = vector.broadcast %cst_66 : f32 to vector<16x1xf32>
    %144 = arith.divf %142, %143 : vector<16x1xf32>
    %145 = vector.broadcast %135 : vector<16x1xf32> to vector<16x128xf32>
    %146 = arith.subf %127, %145 : vector<16x128xf32>
    %cst_67 = arith.constant 9.99999996E-13 : f32
    %147 = vector.broadcast %cst_67 : f32 to vector<16x1xf32>
    %148 = arith.addf %144, %147 : vector<16x1xf32>
    %149 = math.rsqrt %148 : vector<16x1xf32>
    %150 = vector.broadcast %149 : vector<16x1xf32> to vector<16x128xf32>
    %151 = arith.mulf %146, %150 : vector<16x128xf32>
    %152 = vector.broadcast %129 : vector<1x128xf32> to vector<16x128xf32>
    %153 = arith.mulf %151, %152 : vector<16x128xf32>
    %154 = vector.broadcast %131 : vector<1x128xf32> to vector<16x128xf32>
    %155 = arith.addf %153, %154 : vector<16x128xf32>
    %c0_68 = arith.constant 0 : index
    %c0_69 = arith.constant 0 : index
    %156 = vector.load %arg23[%c0_68, %c0_69] : memref<16x128xf32, #tpu.memory_space<vmem>>, vector<16x128xf32>
    tpu.vector_store %arg23[%c0_68, %c0_69], %155 {strides = array<i32>} : memref<16x128xf32, #tpu.memory_space<vmem>>, vector<16x128xf32>,
    %c1_i32 = arith.constant 1 : i32
    %157 = arith.cmpi eq, %arg1, %c1_i32 : i32
    %158 = arith.extui %157 : i1 to i32
    %c0_i32_70 = arith.constant 0 : i32
    %159 = arith.cmpi ne, %158, %c0_i32_70 : i32
    scf.if %159 {
      %160 = arith.truncf %155 : vector<16x128xf32> to vector<16x128xbf16>
      %c0_71 = arith.constant 0 : index
      %c0_72 = arith.constant 0 : index
      %161 = vector.load %arg19[%c0_71, %c0_72] : memref<128x128xbf16, #tpu.memory_space<vmem>>, vector<128x128xbf16>
      %cst_73 = arith.constant dense<0.000000e+00> : vector<16x128xf32>
      %162 = tpu.matmul %160, %161, %cst_73 {dimension_numbers = #tpu.dot_dimension_numbers<[1], [0], [0], [1], [0, 0, 1, 1], [], []>} : vector<16x128xbf16>, vector<128x128xbf16>, vector<16x128xf32> -> vector<16x128xf32>
      %c0_74 = arith.constant 0 : index
      %c0_75 = arith.constant 0 : index
      %163 = vector.load %arg20[%c0_74, %c0_75] : memref<1x128xf32, #tpu.memory_space<vmem>>, vector<1x128xf32>
      %164 = vector.broadcast %163 : vector<1x128xf32> to vector<16x128xf32>
      %165 = arith.addf %162, %164 : vector<16x128xf32>
      %c0_76 = arith.constant 0 : index
      %c0_77 = arith.constant 0 : index
      %c0_78 = arith.constant 0 : index
      %166 = vector.load %arg21[%c0_76, %c0_77, %c0_78] : memref<1x16x128xf32, #tpu.memory_space<vmem>>, vector<1x16x128xf32>
      %167 = vector.shape_cast %166 : vector<1x16x128xf32> to vector<16x128xf32>
      %168 = vector.shape_cast %165 : vector<16x128xf32> to vector<1x16x128xf32>
      tpu.vector_store %arg21[%c0_76, %c0_77, %c0_78], %168 {strides = array<i32>} : memref<1x16x128xf32, #tpu.memory_space<vmem>>, vector<1x16x128xf32>,
      %c0_79 = arith.constant 0 : index
      %c0_80 = arith.constant 0 : index
      %c0_81 = arith.constant 0 : index
      %169 = vector.load %arg4[%c0_79, %c0_80, %c0_81] : memref<1x16x1xi32, #tpu.memory_space<vmem>>, vector<1x16x1xi32>
      %170 = vector.shape_cast %169 : vector<1x16x1xi32> to vector<16x1xi32>
      %c-100_i32 = arith.constant -100 : i32
      %171 = vector.broadcast %c-100_i32 : i32 to vector<16x1xi32>
      %172 = arith.cmpi ne, %170, %171 : vector<16x1xi32>
      %173 = arith.extui %172 : vector<16x1xi1> to vector<16x1xi32>
      %174 = arith.sitofp %173 : vector<16x1xi32> to vector<16x1xf32>
      %cst_82 = arith.constant dense<0xFF800000> : vector<16xf32>
      %175 = vector.multi_reduction <maximumf>, %165, %cst_82 [1] : vector<16x128xf32> to vector<16xf32>
      %176 = vector.shape_cast %175 : vector<16xf32> to vector<16x1xf32>
      %177 = vector.broadcast %176 : vector<16x1xf32> to vector<16x128xf32>
      %178 = arith.subf %165, %177 : vector<16x128xf32>
      %179 = math.exp %178 : vector<16x128xf32>
      %cst_83 = arith.constant dense<0.000000e+00> : vector<16xf32>
      %180 = vector.multi_reduction <add>, %179, %cst_83 [1] : vector<16x128xf32> to vector<16xf32>
      %181 = vector.shape_cast %180 : vector<16xf32> to vector<16x1xf32>
      %182 = math.log %181 : vector<16x1xf32>
      %183 = arith.addf %182, %176 : vector<16x1xf32>
      %184 = tpu.iota {dimensions = array<i32: 1>} : vector<16x128xi32>
      %185 = vector.broadcast %170 : vector<16x1xi32> to vector<16x128xi32>
      %186 = arith.cmpi eq, %184, %185 : vector<16x128xi32>
      %cst_84 = arith.constant 0.000000e+00 : f32
      %187 = vector.broadcast %cst_84 : f32 to vector<16x128xf32>
      %188 = arith.select %186, %165, %187 : vector<16x128xi1>, vector<16x128xf32>
      %cst_85 = arith.constant dense<0.000000e+00> : vector<16xf32>
      %189 = vector.multi_reduction <add>, %188, %cst_85 [1] : vector<16x128xf32> to vector<16xf32>
      %190 = vector.shape_cast %189 : vector<16xf32> to vector<16x1xf32>
      %191 = arith.subf %183, %190 : vector<16x1xf32>
      %192 = arith.mulf %191, %174 : vector<16x1xf32>
      %c0_86 = arith.constant 0 : index
      %c0_87 = arith.constant 0 : index
      %c0_88 = arith.constant 0 : index
      %193 = vector.load %arg22[%c0_86, %c0_87, %c0_88] : memref<1x16x1xf32, #tpu.memory_space<vmem>>, vector<1x16x1xf32>
      %194 = vector.shape_cast %193 : vector<1x16x1xf32> to vector<16x1xf32>
      %195 = vector.shape_cast %192 : vector<16x1xf32> to vector<1x16x1xf32>
      tpu.vector_store %arg22[%c0_86, %c0_87, %c0_88], %195 {strides = array<i32>} : memref<1x16x1xf32, #tpu.memory_space<vmem>>, vector<1x16x1xf32>,
    } else {
    }
    return
  }
  func.func @transform_0(%arg0: i32, %arg1: i32) -> (i32, i32, i32) {
    %c0_i32 = arith.constant 0 : i32
    %c0_i32_0 = arith.constant 0 : i32
    %c0_i32_1 = arith.constant 0 : i32
    return %arg0, %c0_i32, %c0_i32_0 : i32, i32, i32
  }
  func.func @transform_1(%arg0: i32, %arg1: i32) -> (i32, i32, i32) {
    %c0_i32 = arith.constant 0 : i32
    %c0_i32_0 = arith.constant 0 : i32
    %c0_i32_1 = arith.constant 0 : i32
    return %arg0, %c0_i32, %c0_i32_0 : i32, i32, i32
  }
  func.func @transform_2(%arg0: i32, %arg1: i32) -> (i32, i32, i32) {
    %c0_i32 = arith.constant 0 : i32
    %c0_i32_0 = arith.constant 0 : i32
    %c0_i32_1 = arith.constant 0 : i32
    return %arg0, %c0_i32, %c0_i32_0 : i32, i32, i32
  }
  func.func @transform_3(%arg0: i32, %arg1: i32) -> (i32, i32) {
    %c0_i32 = arith.constant 0 : i32
    %c0_i32_0 = arith.constant 0 : i32
    %c0_i32_1 = arith.constant 0 : i32
    return %c0_i32, %c0_i32_0 : i32, i32
  }
  func.func @transform_4(%arg0: i32, %arg1: i32) -> (i32, i32) {
    %c0_i32 = arith.constant 0 : i32
    %c0_i32_0 = arith.constant 0 : i32
    %c0_i32_1 = arith.constant 0 : i32
    return %c0_i32, %c0_i32_0 : i32, i32
  }
  func.func @transform_5(%arg0: i32, %arg1: i32) -> (i32, i32, i32) {
    %c0_i32 = arith.constant 0 : i32
    %c0_i32_0 = arith.constant 0 : i32
    %c0_i32_1 = arith.constant 0 : i32
    return %arg1, %c0_i32, %c0_i32_0 : i32, i32, i32
  }
  func.func @transform_6(%arg0: i32, %arg1: i32) -> (i32, i32, i32) {
    %c0_i32 = arith.constant 0 : i32
    %c0_i32_0 = arith.constant 0 : i32
    %c0_i32_1 = arith.constant 0 : i32
    return %arg1, %c0_i32, %c0_i32_0 : i32, i32, i32
  }
  func.func @transform_7(%arg0: i32, %arg1: i32) -> (i32, i32, i32) {
    %c0_i32 = arith.constant 0 : i32
    %c0_i32_0 = arith.constant 0 : i32
    %c0_i32_1 = arith.constant 0 : i32
    return %arg1, %c0_i32, %c0_i32_0 : i32, i32, i32
  }
  func.func @transform_8(%arg0: i32, %arg1: i32) -> (i32, i32, i32) {
    %c0_i32 = arith.constant 0 : i32
    %c0_i32_0 = arith.constant 0 : i32
    %c0_i32_1 = arith.constant 0 : i32
    return %arg1, %c0_i32, %c0_i32_0 : i32, i32, i32
  }
  func.func @transform_9(%arg0: i32, %arg1: i32) -> (i32, i32, i32) {
    %c0_i32 = arith.constant 0 : i32
    %c0_i32_0 = arith.constant 0 : i32
    %c0_i32_1 = arith.constant 0 : i32
    return %arg1, %c0_i32, %c0_i32_0 : i32, i32, i32
  }
  func.func @transform_10(%arg0: i32, %arg1: i32) -> (i32, i32, i32) {
    %c0_i32 = arith.constant 0 : i32
    %c0_i32_0 = arith.constant 0 : i32
    %c0_i32_1 = arith.constant 0 : i32
    return %arg1, %c0_i32, %c0_i32_0 : i32, i32, i32
  }
  func.func @transform_11(%arg0: i32, %arg1: i32) -> (i32, i32, i32) {
    %c0_i32 = arith.constant 0 : i32
    %c0_i32_0 = arith.constant 0 : i32
    %c0_i32_1 = arith.constant 0 : i32
    return %arg1, %c0_i32, %c0_i32_0 : i32, i32, i32
  }
  func.func @transform_12(%arg0: i32, %arg1: i32) -> (i32, i32, i32) {
    %c0_i32 = arith.constant 0 : i32
    %c0_i32_0 = arith.constant 0 : i32
    %c0_i32_1 = arith.constant 0 : i32
    return %arg1, %c0_i32, %c0_i32_0 : i32, i32, i32
  }
  func.func @transform_13(%arg0: i32, %arg1: i32) -> (i32, i32, i32) {
    %c0_i32 = arith.constant 0 : i32
    %c0_i32_0 = arith.constant 0 : i32
    %c0_i32_1 = arith.constant 0 : i32
    return %arg1, %c0_i32, %c0_i32_0 : i32, i32, i32
  }
  func.func @transform_14(%arg0: i32, %arg1: i32) -> (i32, i32, i32) {
    %c0_i32 = arith.constant 0 : i32
    %c0_i32_0 = arith.constant 0 : i32
    %c0_i32_1 = arith.constant 0 : i32
    return %arg1, %c0_i32, %c0_i32_0 : i32, i32, i32
  }
  func.func @transform_15(%arg0: i32, %arg1: i32) -> (i32, i32, i32) {
    %c0_i32 = arith.constant 0 : i32
    %c0_i32_0 = arith.constant 0 : i32
    %c0_i32_1 = arith.constant 0 : i32
    return %arg1, %c0_i32, %c0_i32_0 : i32, i32, i32
  }
  func.func @transform_16(%arg0: i32, %arg1: i32) -> (i32, i32, i32) {
    %c0_i32 = arith.constant 0 : i32
    %c0_i32_0 = arith.constant 0 : i32
    %c0_i32_1 = arith.constant 0 : i32
    return %arg1, %c0_i32, %c0_i32_0 : i32, i32, i32
  }
  func.func @transform_17(%arg0: i32, %arg1: i32) -> (i32, i32) {
    %c0_i32 = arith.constant 0 : i32
    %c0_i32_0 = arith.constant 0 : i32
    %c0_i32_1 = arith.constant 0 : i32
    return %c0_i32, %c0_i32_0 : i32, i32
  }
  func.func @transform_18(%arg0: i32, %arg1: i32) -> (i32, i32) {
    %c0_i32 = arith.constant 0 : i32
    %c0_i32_0 = arith.constant 0 : i32
    %c0_i32_1 = arith.constant 0 : i32
    return %c0_i32, %c0_i32_0 : i32, i32
  }
  func.func @transform_19(%arg0: i32, %arg1: i32) -> (i32, i32, i32) {
    %c0_i32 = arith.constant 0 : i32
    %c0_i32_0 = arith.constant 0 : i32
    %c0_i32_1 = arith.constant 0 : i32
    return %arg0, %c0_i32, %c0_i32_0 : i32, i32, i32
  }
  func.func @transform_20(%arg0: i32, %arg1: i32) -> (i32, i32, i32) {
    %c0_i32 = arith.constant 0 : i32
    %c0_i32_0 = arith.constant 0 : i32
    %c0_i32_1 = arith.constant 0 : i32
    return %arg0, %c0_i32, %c0_i32_0 : i32, i32, i32
  }
}

</mosaic_0001>

<bundles_post_ra>
// kernel: bert_punc_forward.1
= control target key start
LH: loop header
LB: loop body
LE: loop exit
PB: predicated region body
PF: predicated region fallthrough
CT: control target
= control target key end

     0   :  { %s3658_s0 = inlined_call_operand.vmem [shape: f32[2,16,128], index: 0, kind: input, shape index: {}]   ;;  %s3659_s1 = inlined_call_operand.vmem [shape: f32[2,1,16], index: 1, kind: input, shape index: {}]   ;;  %s3660_s2 = inlined_call_operand.vmem [shape: s32[2,16,1], index: 2, kind: input, shape index: {}]   ;;  %s3661_s3 = inlined_call_operand.vmem [shape: f32[1,128], index: 3, kind: input, shape index: {}]   ;;  %s3662_s4 = inlined_call_operand.vmem [shape: f32[1,128], index: 4, kind: input, shape index: {}]   ;;  %s3663_s5 = inlined_call_operand.vmem [shape: bf16[2,128,384], index: 5, kind: input, shape index: {}]   ;;  %s3664_s6 = inlined_call_operand.vmem [shape: f32[2,1,384], index: 6, kind: input, shape index: {}]   ;;  %s3665_s7 = inlined_call_operand.vmem [shape: bf16[2,128,128], index: 7, kind: input, shape index: {}]   ;;  %s3666_s8 = inlined_call_operand.vmem [shape: f32[2,1,128], index: 8, kind: input, shape index: {}]   ;;  %s3667_s9 = inlined_call_operand.vmem [shape: f32[2,1,128], index: 9, kind: input, shape index: {}]   ;;  %s3668_s10 = inlined_call_operand.vmem [shape: f32[2,1,128], index: 10, kind: input, shape index: {}]   ;;  %s3669_s11 = inlined_call_operand.vmem [shape: bf16[2,128,256], index: 11, kind: input, shape index: {}]   ;;  %s3670_s12 = inlined_call_operand.vmem [shape: f32[2,1,256], index: 12, kind: input, shape index: {}]   ;;  %s3671_s13 = inlined_call_operand.hbm [shape: bf16[2,256,128], index: 13, kind: input, shape index: {}]   ;;  %s3672_s14 = inlined_call_operand.vmem [shape: f32[2,1,128], index: 14, kind: input, shape index: {}]   ;;  %s3673_s15 = inlined_call_operand.vmem [shape: f32[2,1,128], index: 15, kind: input, shape index: {}]   ;;  %s3674_s16 = inlined_call_operand.vmem [shape: f32[2,1,128], index: 16, kind: input, shape index: {}]   ;;  %s3675_s17 = inlined_call_operand.vmem [shape: bf16[128,128], index: 17, kind: input, shape index: {}]   ;;  %s3676_s18 = inlined_call_operand.vmem [shape: f32[1,128], index: 18, kind: input, shape index: {}]   ;;  %s3677_s19 = inlined_call_operand.vmem [shape: f32[2,16,128], index: 19, kind: output, shape index: {0}]   ;;  %s3678_s20 = inlined_call_operand.vmem [shape: f32[2,16,1], index: 20, kind: output, shape index: {1}]  }
   0x1   :  { %3690 = sst [smem:[#allocation18_spill]] %s3658_s0 }
   0x2   :  { %3691 = sst [smem:[#allocation19_spill]] %s3659_s1 }
   0x3   :  { %3692 = sst [smem:[#allocation20_spill]] %s3660_s2 }
   0x4   :  { %3693 = sst [smem:[#allocation21_spill]] %s3661_s3 }
   0x5   :  { %3694 = sst [smem:[#allocation22_spill]] %s3662_s4 }
   0x6   :  { %3695 = sst [smem:[#allocation23_spill]] %s3663_s5 }
   0x7   :  { %3696 = sst [smem:[#allocation24_spill]] %s3664_s6 }
   0x8   :  { %3697 = sst [smem:[#allocation25_spill]] %s3665_s7 }
   0x9   :  { %3698 = sst [smem:[#allocation26_spill]] %s3669_s11 }
   0xa   :  { %3699 = sst [smem:[#allocation27_spill]] %s3670_s12 }
   0xb   :  { %3700 = sst [smem:[#allocation28_spill]] %s3671_s13 }
   0xc   :  { %3701 = sst [smem:[#allocation29_spill]] %s3675_s17 }
   0xd   :  { %3702 = sst [smem:[#allocation30_spill]] %s3676_s18 }
   0xe   :  { %3703 = sst [smem:[#allocation31_spill]] %s3677_s19 }
   0xf   :  { %3704 = sst [smem:[#allocation32_spill]] %s3678_s20 }
  0x10   :  { %26 = vsyncpa [#allocation4], 0 }
  0x11   :  { %28 = vsyncpa [#allocation4 + $0x1], 0  ;;  %s3180_s1 = smov 0   ;;  %s3182_s22 = smov 0  }
  0x12   :  { %s3184_s23 = smov 0   ;;  %s3186_s24 = smov 0  }
  0x13   :  { %s3188_s2 = smov 0   ;;  %s3190_s25 = smov 0  }
  0x14   :  { %s3192_s3 = smov 0   ;;  %s3194_s26 = smov 0  }
  0x15 LB: > { %3705 = sst [smem:[#allocation6_spill]] %s3039_s22  ;;  %s2483_s27 = sadd.s32 4294967295, %s3063_s26   ;;  %s3063_s26 = sphi %s3194_s26, %s34_s26   ;;  %s3059_s3 = sphi %s3192_s3, %s3753_s3   ;;  %s3055_s25 = sphi %s3190_s25, %s3752_s25   ;;  %s3051_s2 = sphi %s3188_s2, %s3751_s2   ;;  %s3047_s24 = sphi %s3186_s24, %s3750_s24   ;;  %s3043_s23 = sphi %s3184_s23, %s3749_s23   ;;  %s3039_s22 = sphi %s3182_s22, %s3748_s22   ;;  %s3035_s1 = sphi %s3180_s1, %s3747_s1  }
  0x16   : > { %3706 = sst [smem:[#allocation7_spill]] %s3043_s23  ;;  %s43_s28 = sadd.s32 1, %s3055_s25 }
  0x17   : > { %3707 = sst [smem:[#allocation8_spill]] %s3047_s24  ;;  %p44_p0 = scmp.ge.s32.totalorder %s43_s28, 2 }
  0x18   : > { %3708 = sst [smem:[#allocation9_spill]] %s3055_s25  ;;  %s46_s4 = sadd.s32 1, %s3059_s3 }
  0x19   : > { %3709 = sst [smem:[#allocation10_spill]] %s3059_s3  ;;  %s381_s29 = sadd.s32 1, %s3043_s23 }
  0x1a   : > { %3710 = sst [smem:[#allocation11_spill]] %s3063_s26  ;;  %p388_p1 = scmp.ne.s32.totalorder %s3043_s23, %s3039_s22 }
  0x1b   : > { %s3755_s28 = smov (%p44_p0, %s43_s28), 0  ;;  %s3757_s4 = smov (!%p44_p0, %s46_s4), %s3059_s3 }
  0x1c   : > { %3711 = sst [smem:[#allocation12_spill]] %s3755_s28  ;;  %s378_s30 = ssub.s32 %s3055_s25, %s3755_s28 }
  0x1d   : > { %p389_p2 = scmp.eq.s32.totalorder %s3063_s26, 0  ;;  %p48_p3 = scmp.ge.s32.totalorder %s3757_s4, 2 }
  0x1e   : > { %p379_p4 = scmp.eq.s32.totalorder %s378_s30, 0  ;;  %p394_p6 = scmp.ne.s32.totalorder %s3039_s22, %s3035_s1 }
  0x1f   : > { %p3230_p5 = por %p389_p2, %p388_p1  ;;  %s3759_s4 = smov (%p48_p3, %s3757_s4), 0 }
  0x20   : > { %3713 = sst [smem:[#allocation13_spill]] %s3759_s4  ;;  %p395_p7 = scmp.eq.s32.totalorder %s2483_s27, 0 }
  0x21   : > { %s3238_s21 = scalar_select %p379_p4, %s3043_s23, %s381_s29  }
  0x22   : > { %p2754_p8 = scmp.lt.s32.totalorder %s3063_s26, 4  ;;  %s680_s18 = sand.u32 1, %s3043_s23  }
  0x23   : > { %3714 = sst [smem:[#allocation14_spill]] %s3238_s21  ;;  %p3242_p9 = por %p395_p7, %p394_p6 }
  0x24   : > { %s2487_s28 = sshll.u32 %s680_s18, 7  ;;  %s2598_s3 = sshll.u32 %s3055_s25, 11 }
  0x25   : > { %s3716_s13 = sld [smem:[#allocation28_spill]]  ;;  %s684_s1 = scalar_lea.vmem [#allocation3], %s2487_s28 }
  0x26   : > { %s691_s29 = sshll.u32 %s684_s1, 4  ;;  %p3254_p10 = pnand %p2754_p8, %p3230_p5  ;;  %s3258_s29 = int_to_ptr.vmem [resolvable:$true] %s691_s29 }
  0x27   : > { %s3260_s4 = scalar_lea.sflag [#allocation4], %s680_s18 }
  0x28   : > { %p2969_p12 = pneg %p3254_p10 }
  0x2b   : > { %s3250_s19 = scalar_lea.hbm %s3716_s13, %s2598_s3  ;;  %s2972_s0 = scalar_lea.hbm %s3716_s13, 4096 }
  0x2c   : > { %s2967_s20 = scalar_lea.hbm %s3250_s19, 2048  ;;  %p2973_p1 = scmp.lt.u32.totalorder %s3250_s19, %s3716_s13 }
  0x2d   : > { %p2968_p11 = scmp.ne.s32.totalorder %s3250_s19, %s2967_s20  ;;  %p2974_p2 = scmp.lt.u32.totalorder %s2972_s0, %s2967_s20 }
  0x2e   : > { %p2976_p4 = scmp.lt.u32.totalorder %s2967_s20, %s3250_s19 }
  0x2f   : > { %p2970_p13 = pnand %p2969_p12, %p2968_p11  ;;  %p2975_p3 = por %p2974_p2, %p2973_p1 }
  0x31   : > { %p2971_p0 = pneg %p2970_p13  ;;  %p2977_p5 = por %p2976_p4, %p2975_p3 }
  0x33   : > { %p2978_p6 = pnand %p2977_p5, %p2971_p0 }
  0x35   : > { %2981 = shalt.err (!%p2978_p6)
}
  0x36   : > { %s2982_s18 = scalar_lea.vmem %s3258_s29, 2048  ;;  %s3065_s3 = smov [#allocation3]  }
  0x37   : > { %p2983_p7 = scmp.ne.s32.totalorder %s3258_s29, %s2982_s18  ;;  %s2987_s28 = sshll.u32 %s3065_s3, 4  ;;  %s2988_s28 = int_to_ptr.vmem [resolvable:$false] %s2987_s28 }
  0x38   : > { %s2989_s30 = scalar_lea.vmem %s2988_s28, 4096  ;;  %p2990_p13 = scmp.lt.s32.totalorder %s3258_s29, %s2988_s28 }
  0x39   : > { %p2985_p8 = pnand %p2983_p7, %p2969_p12  ;;  %p2991_p1 = scmp.lt.s32.totalorder %s2989_s30, %s2982_s18 }
  0x3b   : > { %p2986_p11 = pneg %p2985_p8  ;;  %p2992_p2 = por %p2991_p1, %p2990_p13 }
  0x3d   : > { %p2993_p3 = pnand %p2992_p2, %p2986_p11 }
  0x3f   : > { %2996 = shalt.err (!%p2993_p3)
}
  0x40   : > { %s3066_s20 = smov 64   ;;  %s3067_s0 = smov 4  }
  0x41   : > { %2753 = dma.hbm_to_vmem [thread:$0]  (!%p3254_p10), %s3250_s19, 2048, %s3258_s29, %s3260_s4, %s3066_s20, %s3066_s20, %s3067_s0  }
  0x42   : > { %p2490_p12 = scmp.ge.s32.totalorder %s3063_s26, 1  ;;  %p717_p0 = scmp.lt.s32.totalorder %s3063_s26, 5 }
  0x44   : > { %p718_p4 = pnand %p2490_p12, %p717_p0 }
  0x46   : > { %721 = sbr.rel (%p718_p4) target bundleno = 3637 (0xe35), region = 96 }
  0x4d   : > { %s723_s1 = sand.u32 1, %s3039_s22  }
  0x4e   : > { %s2491_s18 = sshll.u32 %s723_s1, 7  ;;  %s724_s3 = scalar_lea.sflag [#allocation4], %s723_s1 }
  0x4f   : > { %s3291_s28 = scalar_lea.vmem [#allocation3], %s2491_s18 }
  0x50   : > { %3718 = sst [smem:[#allocation15_spill]] %s3291_s28 }
  0x51   : > { %3030 = dma.done.wait (%p3242_p9), %s724_s3, 2048  }
  0x52   : > { %3032 = vsyncadd (%p3242_p9), %s724_s3, 4294965248  ;;  %p843_p10 = scmp.lt.s32.totalorder %s3051_s2, 1  ;;  %p856_p5 = scmp.lt.s32.totalorder %s3047_s24, 1 }
  0x53   : > { %s3721_s1 = sld [smem:[#allocation18_spill]]  ;;  %s3722_s25 = sld [smem:[#allocation20_spill]] }
  0x54   : > { %s3761_s2 = smov (!%p843_p10, %s3051_s2), 1  ;;  %s3724_s7 = sld [smem:[#allocation25_spill]] }
  0x55   : > { %3719 = sst [smem:[#allocation16_spill]] %s3761_s2  ;;  %s2599_s17 = sshll.u32 %s3761_s2, 4 }
  0x56   : > { %s3303_s19 = scalar_select %p856_p5, %s3047_s24, 1 }
  0x57   : > { %s3725_s5 = sld [smem:[#allocation23_spill]]  ;;  %s3726_s6 = sld [smem:[#allocation24_spill]] }
  0x58   : > { %s2746_s23 = smul.u32 192, %s3303_s19  ;;  %s2601_s22 = sshll.u32 %s3303_s19, 6 }
  0x59   : > { %s847_s18 = scalar_lea.vmem %s3721_s1, %s2599_s17  ;;  %s3316_s21 = scalar_lea.vmem %s3722_s25, %s2599_s17 }
  0x5a   : > { %3723 = sst [smem:[#allocation17_spill]] %s3316_s21  ;;  %s2747_s26 = smul.u32 3, %s3303_s19 }
  0x5b   : > { %s3324_s4 = scalar_lea.vmem %s3724_s7, %s2601_s22  ;;  %s2602_s29 = sshll.u32 %s3303_s19, 7 }
  0x5c   : > { %s3727_s11 = sld [smem:[#allocation26_spill]]  ;;  %s2501_s0 = sshll.u32 %s3303_s19, 1 }
  0x5d   : > { %s3329_s20 = scalar_lea.vmem %s3725_s5, %s2746_s23  ;;  %s3338_s30 = scalar_lea.vmem %s3726_s6, %s2747_s26 }
  0x5e   : > { %s3728_s12 = sld [smem:[#allocation27_spill]]  ;;  %s890_s2 = scalar_lea.vmem %s3672_s14, %s3303_s19 }
  0x5f   : > { %s893_s22 = scalar_lea.vmem %s3673_s15, %s3303_s19  ;;  %s896_s23 = scalar_lea.vmem %s3674_s16, %s3303_s19 }
  0x60   : > { %s3729_s6 = sld [smem:[#allocation31_spill]]  ;;  %s3730_s1 = sld [smem:[#allocation32_spill]] }
  0x61   : > { %s3731_s25 = sld [smem:[#allocation8_spill]] }
  0x62   : > { %s3352_s5 = scalar_lea.vmem %s3727_s11, %s2602_s29 }
  0x64   : > { %s3358_s26 = scalar_lea.vmem %s3728_s12, %s2501_s0 }
  0x66   : > { %s3375_s11 = scalar_lea.vmem %s3729_s6, %s2599_s17  ;;  %s3380_s12 = scalar_lea.vmem %s3730_s1, %s2599_s17 }
  0x67   : > { %p2506_p9 = scmp.ne.s32.totalorder %s3731_s25, 0 }
  0x68   : > { %v912_v0 = vld [vmem:[%s847_s18] sm:$0xff] (!%p2506_p9)  ;;  %v913_v1 = vld [vmem:[%s847_s18 + $0x8] sm:$0xff] (!%p2506_p9)  ;;  %s3732_s17 = sld [smem:[#allocation21_spill]] (!%p2506_p9)  ;;  %s3733_s3 = sld [smem:[#allocation22_spill]] (!%p2506_p9) }
  0x69   : > { %911 = sbr.rel (%p2506_p9) target bundleno = 421 (0x1a5), region = 104  ;;  %916 = vadd.xlane.f32.xlu0 (!%p2506_p9), %v912_v0 }
  0x6d   : > { %918 = vadd.xlane.f32.xlu0 (!%p2506_p9), %v913_v1 }
  0x6e   : > { %v2507_v17 = vld [vmem:[%s3732_s17] ss:$0 sm:$0xff] (!%p2506_p9) }
  0x6f   : > { %v2508_v19 = vld [vmem:[%s3733_s3] ss:$0 sm:$0xff] (!%p2506_p9) }
  0xf6   : > { %v917_v2 = vpop.xlane.xlu0 %916 }
  0xf7   : > { %v921_v3 = vmul.f32 0.0078125, %v917_v2 }
  0xf9   : > { %v923_v4 = vsub.f32 %v912_v0, %v921_v3 }
  0xfa   : > { %v919_v5 = vpop.xlane.xlu0 %918 }
  0xfb   : > { %v922_v6 = vmul.f32 0.0078125, %v919_v5  ;;  %v925_v7 = vmul.f32 %v923_v4, %v923_v4 }
  0xfd   : > { %v924_v8 = vsub.f32 %v913_v1, %v922_v6  ;;  %927 = vadd.xlane.f32.xlu1 %v925_v7 }
  0xff   : > { %v926_v9 = vmul.f32 %v924_v8, %v924_v8 }
 0x101   : > { %929 = vadd.xlane.f32.xlu1 %v926_v9 }
 0x18a   : > { %v928_v10 = vpop.xlane.xlu1 %927 }
 0x18b   : > { %v931_v11 = vmul.f32 0.0078125, %v928_v10 }
 0x18d   : > { %v933_v12 = vadd.f32 1e-12, %v931_v11 }
 0x18e   : > { %v930_v13 = vpop.xlane.xlu1 %929 }
 0x18f   : > { %2828 = vrsqrt.f32 %v933_v12  ;;  %v932_v14 = vmul.f32 0.0078125, %v930_v13 }
 0x191   : > { %v934_v15 = vadd.f32 1e-12, %v932_v14 }
 0x193   : > { %2830 = vrsqrt.f32 %v934_v15 }
 0x199   : > { %v2829_v16 = vpop.eup %2828 }
 0x19a   : > { %v937_v18 = vmul.f32 %v2829_v16, %v923_v4 }
 0x19c   : > { %v945_v20 = vmul.f32 %v2507_v17, %v937_v18 }
 0x19d   : > { %v2831_v21 = vpop.eup %2830 }
 0x19e   : > { %v953_v22 = vadd.f32 %v2508_v19, %v945_v20  ;;  %v938_v23 = vmul.f32 %v2831_v21, %v924_v8 }
 0x1a0   : > { %955 = vst [vmem:[#allocation2] sm:$0xff] %v953_v22  ;;  %v946_v24 = vmul.f32 %v2507_v17, %v938_v23 }
 0x1a2   : > { %v954_v25 = vadd.f32 %v2508_v19, %v946_v24 }
 0x1a4   : > { %956 = vst [vmem:[#allocation2 + $0x8] sm:$0xff] %v954_v25 }
 0x1a5 PF: > { %v2837_v26 = vld [vmem:[%s3329_s20 + $0x4] ss:$12 sps:$4 sm:$0xff]   ;;  %v2839_v27 = vld [vmem:[%s3329_s20] ss:$12 sps:$4 sm:$0xff]   ;;  %v3068_v28 = vmov 0   ;;  %v3069_v29 = vmov 0.0   ;;  %v994_v55 = vlaneseq  ;;  %s3737_s0 = scalar_lea.vmem %s3666_s8, %s3303_s19  ;;  %s3740_s18 = scalar_lea.vmem %s3668_s10, %s3303_s19 }
 0x1a6   : > { %1169 = vmatprep.mubr.bf16.mxu0 %v3068_v28  ;;  %2662 = vmatprep.subr.bf16.mxu1 %v3069_v29  ;;  %v2840_v30 = vld [vmem:[%s3329_s20 + $0x1c] ss:$12 sps:$4 sm:$0xff]   ;;  %v2842_v31 = vld [vmem:[%s3329_s20 + $0x18] ss:$12 sps:$4 sm:$0xff]   ;;  %v2843_v32 = vld [vmem:[%s3329_s20 + $0x34] ss:$12 sps:$4 sm:$0xff]  }
 0x1a7   : > { %1137 = vmatprep.subr.bf16.mxu0 %v2837_v26  ;;  %v2845_v33 = vld [vmem:[%s3329_s20 + $0x30] ss:$12 sps:$4 sm:$0xff]   ;;  %v2846_v34 = vld [vmem:[%s3329_s20 + $0x4c] ss:$12 sps:$4 sm:$0xff]   ;;  %v2848_v35 = vld [vmem:[%s3329_s20 + $0x48] ss:$12 sps:$4 sm:$0xff]  }
 0x1a8   : > { %1138 = vmatpush1.bf16.msra.mxu0 %v2839_v27  ;;  %v2849_v36 = vld [vmem:[%s3329_s20 + $0x64] ss:$12 sps:$4 sm:$0xff]   ;;  %v2861_v37 = vld [vmem:[%s3329_s20 + $0x8] ss:$12 sps:$4 sm:$0xff]   ;;  %v2862_v38 = vld [vmem:[%s3329_s20 + $0x20] ss:$12 sps:$4 sm:$0xff]  }
 0x1a9   : > { %1139 = vmatprep.subr.bf16.mxu0 %v2840_v30  ;;  %2663 = vmatpush3.bf16.msra.mxu1 %v2861_v37  ;;  %v2851_v39 = vld [vmem:[%s3329_s20 + $0x60] ss:$12 sps:$4 sm:$0xff]   ;;  %v2852_v40 = vld [vmem:[%s3329_s20 + $0x7c] ss:$12 sps:$4 sm:$0xff]   ;;  %v2854_v41 = vld [vmem:[%s3329_s20 + $0x78] ss:$12 sps:$4 sm:$0xff]  }
 0x1aa   : > { %2664 = vmatprep.subr.bf16.mxu1 %v3069_v29  ;;  %v2855_v42 = vld [vmem:[%s3329_s20 + $0x94] ss:$12 sps:$4 sm:$0xff]   ;;  %v2863_v43 = vld [vmem:[%s3329_s20 + $0x38] ss:$12 sps:$4 sm:$0xff]   ;;  %v2864_v44 = vld [vmem:[%s3329_s20 + $0x50] ss:$12 sps:$4 sm:$0xff]  }
 0x1ab   : > { %v2857_v45 = vld [vmem:[%s3329_s20 + $0x90] ss:$12 sps:$4 sm:$0xff]   ;;  %v2858_v46 = vld [vmem:[%s3329_s20 + $0xac] ss:$12 sps:$4 sm:$0xff]   ;;  %v2865_v47 = vld [vmem:[%s3329_s20 + $0x68] ss:$12 sps:$4 sm:$0xff]  }
 0x1ac   : > { %1140 = vmatpush1.bf16.msra.mxu0 %v2842_v31  ;;  %v2860_v48 = vld [vmem:[%s3329_s20 + $0xa8] ss:$12 sps:$4 sm:$0xff]   ;;  %v3415_v49 = vld [vmem:[#allocation2] sm:$0xff]  ;;  %v2868_v54 = vld [vmem:[%s3329_s20 + $0xb0] ss:$12 sps:$4 sm:$0xff]   ;;  %vm3070_vm0 = vmmov 0  }
 0x1ad   : > { %1141 = vmatprep.subr.bf16.mxu0 %v2843_v32  ;;  %2665 = vmatpush3.bf16.msra.mxu1 %v2862_v38  ;;  %v3417_v50 = vld [vmem:[#allocation2 + $0x8] sm:$0xff]  ;;  %v2867_v53 = vld [vmem:[%s3329_s20 + $0x98] ss:$12 sps:$4 sm:$0xff]   ;;  %v3437_v56 = vshrl.u32 %v994_v55, 7  ;;  %v992_v58 = vld [vmem:[%s3338_s30] sm:$0x7] }
 0x1ae   : > { %2666 = vmatprep.subr.bf16.mxu1 %v3069_v29  ;;  %v2866_v51 = vld [vmem:[%s3329_s20 + $0x80] ss:$12 sps:$4 sm:$0xff]   ;;  %v959_v52 = vpack.c.bf16 %v3417_v50, %v3415_v49  ;;  %2678 = vmatprep.mubr.msk.bf16.mxu1 %vm3070_vm0, %v3069_v29  ;;  %vm1224_vm1 = vcmask 523264   ;;  %s3071_s30 = smov 64   ;;  %s3734_s20 = sld [smem:[#allocation16_spill]]  ;;  %vm1282_vm2 = vcmask 130048  }
 0x1af   : > { %v996_v57 = vsub.s32 0, %v3437_v56  ;;  %v1000_v59 = vsub.s32 1, %v3437_v56  ;;  %v1004_v9 = vsub.s32 2, %v3437_v56  ;;  %s3735_s29 = sld [smem:[#allocation19_spill]]  ;;  %s3738_s1 = sld [smem:[#allocation15_spill]] }
 0x1b0   : > { %1142 = vmatpush1.bf16.msra.mxu0 %v2845_v33  ;;  %s3741_s21 = sld [smem:[#allocation8_spill]] }
 0x1b1   : > { %1143 = vmatprep.subr.bf16.mxu0 %v2846_v34  ;;  %2667 = vmatpush3.bf16.msra.mxu1 %v2863_v43  ;;  %v997_v60 = vrot.slane %v992_v58, %v996_v57  ;;  %v1001_v62 = vrot.slane %v992_v58, %v1000_v59  ;;  %v1005_v10 = vrot.slane %v992_v58, %v1004_v9 }
 0x1b2   : > { %2668 = vmatprep.subr.bf16.mxu1 %v3069_v29 }
 0x1b4   : > { %1144 = vmatpush1.bf16.msra.mxu0 %v2848_v35 }
 0x1b5   : > { %1145 = vmatprep.subr.bf16.mxu0 %v2849_v36  ;;  %2669 = vmatpush3.bf16.msra.mxu1 %v2864_v44  ;;  %s3736_s27 = scalar_lea.vmem %s3735_s29, %s3734_s20 }
 0x1b6   : > { %2670 = vmatprep.subr.bf16.mxu1 %v3069_v29  ;;  %v2534_v19 = vld [vmem:[%s3736_s27] ss:$0 sm:$0xff]  ;;  %p2584_p6 = scmp.ne.s32.totalorder %s3741_s21, 1 }
 0x1b7   : > { %vm3073_vm3 = vmmov (!%p2584_p6), 0   ;;  %s3745_s20 = sld [smem:[#allocation30_spill]] (!%p2584_p6)  ;;  %vm2222_vm8 = vcmask (!%p2584_p6), 7168  }
 0x1b8   : > { %1146 = vmatpush1.bf16.msra.mxu0 %v2851_v39 }
 0x1b9   : > { %1147 = vmatprep.subr.bf16.mxu0 %v2852_v40  ;;  %2671 = vmatpush3.bf16.msra.mxu1 %v2865_v47 }
 0x1ba   : > { %2672 = vmatprep.subr.bf16.mxu1 %v3069_v29 }
 0x1bc   : > { %1148 = vmatpush1.bf16.msra.mxu0 %v2854_v41 }
 0x1bd   : > { %1149 = vmatprep.subr.bf16.mxu0 %v2855_v42  ;;  %2673 = vmatpush3.bf16.msra.mxu1 %v2866_v51 }
 0x1be   : > { %2674 = vmatprep.subr.bf16.mxu1 %v3069_v29 }
 0x1c0   : > { %1150 = vmatpush1.bf16.msra.mxu0 %v2857_v45 }
 0x1c1   : > { %1151 = vmatprep.subr.bf16.mxu0 %v2858_v46  ;;  %2675 = vmatpush3.bf16.msra.mxu1 %v2867_v53 }
 0x1c2   : > { %2676 = vmatprep.subr.bf16.mxu1 %v3069_v29 }
 0x1c4   : > { %1152 = vmatpush1.bf16.msra.mxu0 %v2860_v48 }
 0x1c5   : > { %2706 = vmatprep.subr.bf16.mxu0 %v3069_v29  ;;  %2677 = vmatpush3.bf16.msra.mxu1 %v2868_v54 }
 0x1c6   : > { %2682 = vmatprep.subr.bf16.mxu1 %v3069_v29 }
 0x1c7   : > { %1170 = vmatmul.mubr.bf16.vlgmr.msra.gmra.mrb[0].mxu0 %v959_v52 }
 0x1c8   : > { %2722 = vmatprep.mubr.msk.bf16.mxu0 %vm3070_vm0, %v3069_v29  ;;  %2679 = vmatmul.mubr.bf16.vlgmr.msra.gmra.mrb[0].mxu1 %v959_v52 }
 0x1c9   : > { %2684 = vmatprep.mubr.msk.bf16.mxu1 %vm3070_vm0, %v3069_v29 }
 0x29a   : > { %v1171_v61 = vpop.f32.mrb[0].mxu0 }
 0x29b   : > { %v1173_v63 = vpop.f32.mrb[1].mxu0  ;;  %v1172_v1 = vadd.f32 %v1171_v61, %v997_v60  ;;  %v1214_v11 = vpop.f32.mrb[0].mxu1 }
 0x29c   : > { %v1175_v0 = vpop.f32.mrb[2].mxu0  ;;  %v1174_v4 = vadd.f32 %v1173_v63, %v1001_v62  ;;  %v1215_v12 = vadd.f32 %v1214_v11, %v1005_v10  ;;  %v2680_v13 = vpop.f32.mrb[1].mxu1 }
 0x29d   : > { %v1176_v2 = vadd.f32 %v1175_v0, %v997_v60  ;;  %v1177_v3 = vpop.f32.mrb[3].mxu0  ;;  %v1217_v14 = vpop.f32.mrb[2].mxu1  ;;  %v2869_v13 = vld [vmem:[%s3324_s4] sm:$0xff]  }
 0x29e   : > { %v1178_v5 = vadd.f32 %v1177_v3, %v1001_v62  ;;  %v1218_v15 = vadd.f32 %v1217_v14, %v1005_v10  ;;  %v2681_v16 = vpop.f32.mrb[3].mxu1  ;;  %2707 = vmatpush3.bf16.msra.mxu0 %v2869_v13  ;;  %v2870_v14 = vld [vmem:[%s3324_s4 + $0x8] sm:$0xff]  }
 0x29f   : > { %v1222_v6 = vpack.c.bf16 %v1176_v2, %v1172_v1  ;;  %2708 = vmatprep.subr.bf16.mxu0 %v3069_v29  ;;  %v2873_v16 = vld [vmem:[%s3324_s4 + $0x20] sm:$0xff]  }
 0x2a0   : > { %v1223_v7 = vpack.c.bf16 %v1178_v5, %v1174_v4  ;;  %v1302_v17 = vpack.c.bf16 %v1218_v15, %v1215_v12  ;;  %v2871_v15 = vld [vmem:[%s3324_s4 + $0x10] sm:$0xff]   ;;  %v2897_v13 = vld [vmem:[%s3352_s5 + $0x64] ss:$8 sps:$4 sm:$0xff]  }
 0x2a2   : > { %1355 = vrot.lane.b32.xlu1 %v1223_v7, %s3071_s30  ;;  %v1229_v8 = vsel %vm1224_vm1, %v1223_v7, 0  ;;  %2709 = vmatpush3.bf16.msra.mxu0 %v2870_v14  ;;  %v2895_v14 = vld [vmem:[%s3352_s5 + $0x60] ss:$8 sps:$4 sm:$0xff]  }
 0x2a3   : > { %2683 = vmatpush3.bf16.xpose.msra.mxu1 %v1229_v8  ;;  %2710 = vmatprep.subr.bf16.mxu0 %v3069_v29 }
 0x2a4   : > { %2688 = vmatprep.subr.bf16.mxu1 %v3069_v29 }
 0x2a6   : > { %1352 = vrot.lane.b32.xlu1 %v1222_v6, %s3071_s30  ;;  %2711 = vmatpush3.bf16.msra.mxu0 %v2871_v15  ;;  %v2900_v15 = vld [vmem:[%s3352_s5 + $0x74] ss:$8 sps:$4 sm:$0xff]  }
 0x2a7   : > { %2712 = vmatprep.subr.bf16.mxu0 %v3069_v29 }
 0x2aa   : > { %2685 = vmatmul.mubr.msk.bf16.vlgmr.msra.gmra.mrb[4].mxu1 %vm1224_vm1, %v1222_v6 }
 0x2ab   : > { %2690 = vmatprep.mubr.msk.bf16.mxu1 %vm3070_vm0, %v3069_v29  ;;  %2689 = vmatpush3.bf16.msra.mxu1 %v1302_v17 }
 0x2ac   : > { %2694 = vmatprep.subr.bf16.mxu1 %v3069_v29 }
 0x314   : > { %v1356_v39 = vpop.permute.xlu1 %1355 }
 0x315   : > { %v1361_v41 = vsel %vm1224_vm1, %v1356_v39, 0 }
 0x318   : > { %v1353_v42 = vpop.permute.xlu1 %1352 }
 0x37d   : > { %v1265_v18 = vpop.f32.mrb[4].mxu1 }
 0x37e   : > { %v1272_v20 = vmul.f32 0.125, %v1265_v18  ;;  %v2686_v21 = vpop.f32.mrb[5].mxu1  ;;  %v2875_v18 = vld [vmem:[%s3324_s4 + $0x30] sm:$0xff]  }
 0x37f   : > { %v1268_v22 = vpop.f32.mrb[6].mxu1  ;;  %v2876_v21 = vld [vmem:[%s3324_s4 + $0x38] sm:$0xff]  }
 0x380   : > { %v1273_v23 = vmul.f32 0.125, %v1268_v22  ;;  %v2687_v24 = vpop.f32.mrb[7].mxu1  ;;  %v1280_v25 = vadd.f32 %v2534_v19, %v1272_v20 }
 0x382   : > { %v1283_v26 = vsel %vm1282_vm2, %v1280_v25, -inf  ;;  %v1281_v27 = vadd.f32 %v2534_v19, %v1273_v23 }
 0x383   : > { %1284 = vmax.xlane.f32.xlu0 %v1283_v26 }
 0x384   : > { %v1286_v30 = vsel %vm1282_vm2, %v1281_v27, -inf }
 0x387   : > { %1287 = vmax.xlane.f32.xlu0 %v1286_v30 }
 0x410   : > { %v1285_v31 = vpop.xlane.xlu0 %1284 }
 0x411   : > { %v1289_v32 = vsub.f32 %v1280_v25, %v1285_v31 }
 0x413   : > { %v1291_v33 = vmul.f32 1.442695, %v1289_v32 }
 0x414   : > { %v1288_v34 = vpop.xlane.xlu0 %1287 }
 0x415   : > { %v1290_v35 = vsub.f32 %v1281_v27, %v1288_v34  ;;  %2917 = vpow2.f32 %v1291_v33 }
 0x417   : > { %v1293_v36 = vmul.f32 1.442695, %v1290_v35 }
 0x419   : > { %2919 = vpow2.f32 %v1293_v36 }
 0x41f   : > { %v2918_v37 = vpop.eup %2917 }
 0x420   : > { %v1295_v11 = vsel %vm1282_vm2, %v2918_v37, 0.0 }
 0x423   : > { %v2920_v38 = vpop.eup %2919 }
 0x424   : > { %v1301_v40 = vpack.c.bf16 %v2920_v38, %v2918_v37  ;;  %v1298_v12 = vsel %vm1282_vm2, %v2920_v38, 0.0 }
 0x426   : > { %2691 = vmatmul.mubr.msk.bf16.vlgmr.msra.gmra.mrb[8].mxu1 %vm1282_vm2, %v1301_v40 }
 0x427   : > { %2695 = vmatpush3.bf16.xpose.msra.mxu1 %v1361_v41  ;;  %2696 = vmatprep.mubr.msk.bf16.mxu1 %vm3070_vm0, %v3069_v29 }
 0x428   : > { %2700 = vmatprep.subr.bf16.mxu1 %v3069_v29 }
 0x42e   : > { %2697 = vmatmul.mubr.msk.bf16.vlgmr.msra.gmra.mrb[12].mxu1 %vm1224_vm1, %v1353_v42 }
 0x42f   : > { %2702 = vmatprep.mubr.msk.bf16.mxu1 %vm3070_vm0, %v3069_v29 }
 0x4f9   : > { %v3470_v43 = vpop.f32.mrb[8].mxu1 }
 0x4fa   : > { %v2692_v44 = vpop.f32.mrb[9].mxu1 }
 0x4fb   : > { %v3472_v45 = vpop.f32.mrb[10].mxu1 }
 0x4fc   : > { %v2693_v46 = vpop.f32.mrb[11].mxu1 }
 0x4fd   : > { %v2538_v46 = vld [vmem:[%s3737_s0] ss:$0 sm:$0xff] }
 0x501   : > { %v1397_v47 = vpop.f32.mrb[12].mxu1 }
 0x502   : > { %v1404_v48 = vmul.f32 0.125, %v1397_v47  ;;  %v2698_v51 = vpop.f32.mrb[13].mxu1 }
 0x503   : > { %v1400_v52 = vpop.f32.mrb[14].mxu1 }
 0x504   : > { %v1405_v53 = vmul.f32 0.125, %v1400_v52  ;;  %v2699_v54 = vpop.f32.mrb[15].mxu1  ;;  %v1406_v58 = vadd.f32 %v2534_v19, %v1404_v48 }
 0x506   : > { %v1408_v60 = vsel %vm1282_vm2, %v1406_v58, -inf  ;;  %v1407_v61 = vadd.f32 %v2534_v19, %v1405_v53 }
 0x507   : > { %1409 = vmax.xlane.f32.xlu0 %v1408_v60  ;;  %v2879_v60 = vld [vmem:[%s3352_s5 + $0x4] ss:$8 sps:$4 sm:$0xff]  }
 0x508   : > { %v1411_v62 = vsel %vm1282_vm2, %v1407_v61, -inf }
 0x509   : > { %1412 = vmax.xlane.f32.xlu1 %v1411_v62  ;;  %v2880_v62 = vld [vmem:[%s3352_s5 + $0x10] ss:$8 sps:$4 sm:$0xff]  }
 0x51d   : > { %1428 = vrot.lane.b32.xlu0 %v1302_v17, %s3071_s30  ;;  %v2874_v17 = vld [vmem:[%s3324_s4 + $0x28] sm:$0xff]  }
 0x594   : > { %v1410_v63 = vpop.xlane.xlu0 %1409 }
 0x595   : > { %v1414_v0 = vsub.f32 %v1406_v58, %v1410_v63  ;;  %v2877_v58 = vld [vmem:[%s3352_s5] ss:$8 sps:$4 sm:$0xff]  }
 0x596   : > { %v1413_v1 = vpop.xlane.xlu1 %1412 }
 0x597   : > { %v1416_v2 = vmul.f32 1.442695, %v1414_v0  ;;  %v1415_v3 = vsub.f32 %v1407_v61, %v1413_v1  ;;  %v2882_v61 = vld [vmem:[%s3352_s5 + $0x14] ss:$8 sps:$4 sm:$0xff]  }
 0x598   : > { %v1429_v4 = vpop.permute.xlu0 %1428 }
 0x599   : > { %2921 = vpow2.f32 %v1416_v2  ;;  %v1418_v5 = vmul.f32 1.442695, %v1415_v3  ;;  %2701 = vmatpush3.bf16.msra.mxu1 %v1429_v4 }
 0x59a   : > { %1754 = vmatprep.subr.bf16.mxu1 %v2879_v60 }
 0x59b   : > { %2923 = vpow2.f32 %v1418_v5  ;;  %v2885_v5 = vld [vmem:[%s3352_s5 + $0x24] ss:$8 sps:$4 sm:$0xff]  }
 0x5a3   : > { %v2922_v6 = vpop.eup %2921 }
 0x5a4   : > { %v1420_v7 = vsel %vm1282_vm2, %v2922_v6, 0.0 }
 0x5a5   : > { %v2924_v8 = vpop.eup %2923  ;;  %1421 = vadd.xlane.f32.xlu0 %v1420_v7  ;;  %v2888_v7 = vld [vmem:[%s3352_s5 + $0x34] ss:$8 sps:$4 sm:$0xff]  }
 0x5a6   : > { %v1423_v9 = vsel %vm1282_vm2, %v2924_v8, 0.0  ;;  %v1426_v10 = vpack.c.bf16 %v2924_v8, %v2922_v6  ;;  %v2883_v6 = vld [vmem:[%s3352_s5 + $0x20] ss:$8 sps:$4 sm:$0xff]   ;;  %v2886_v8 = vld [vmem:[%s3352_s5 + $0x30] ss:$8 sps:$4 sm:$0xff]  }
 0x5a7   : > { %1424 = vadd.xlane.f32.xlu1 %v1423_v9  ;;  %v2891_v9 = vld [vmem:[%s3352_s5 + $0x44] ss:$8 sps:$4 sm:$0xff]  }
 0x5a8   : > { %2703 = vmatmul.mubr.msk.bf16.vlgmr.msra.gmra.mrb[16].mxu1 %vm1282_vm2, %v1426_v10  ;;  %v2889_v10 = vld [vmem:[%s3352_s5 + $0x40] ss:$8 sps:$4 sm:$0xff]  }
 0x5a9   : > { %1786 = vmatprep.mubr.bf16.mxu1 %v3068_v28  ;;  %v2872_v28 = vld [vmem:[%s3324_s4 + $0x18] sm:$0xff]   ;;  %1755 = vmatpush1.bf16.msra.mxu1 %v2877_v58  ;;  %s3744_s4 = sld [smem:[#allocation17_spill]] (!%p2584_p6) }
 0x5aa   : > { %2713 = vmatpush3.bf16.msra.mxu0 %v2872_v28  ;;  %1756 = vmatprep.subr.bf16.mxu1 %v2882_v61  ;;  %v2898_v28 = vld [vmem:[%s3352_s5 + $0x70] ss:$8 sps:$4 sm:$0xff]  }
 0x5ab   : > { %1296 = vadd.xlane.f32.xlu1 %v1295_v11  ;;  %2714 = vmatprep.subr.bf16.mxu0 %v3069_v29  ;;  %v2894_v11 = vld [vmem:[%s3352_s5 + $0x54] ss:$8 sps:$4 sm:$0xff]  }
 0x5ad   : > { %1757 = vmatpush1.bf16.msra.mxu1 %v2880_v62 }
 0x5ae   : > { %2715 = vmatpush3.bf16.msra.mxu0 %v2873_v16  ;;  %1758 = vmatprep.subr.bf16.mxu1 %v2885_v5 }
 0x5af   : > { %1299 = vadd.xlane.f32.xlu1 %v1298_v12  ;;  %2716 = vmatprep.subr.bf16.mxu0 %v3069_v29  ;;  %v2892_v12 = vld [vmem:[%s3352_s5 + $0x50] ss:$8 sps:$4 sm:$0xff]   ;;  %s3739_s5 = scalar_lea.vmem %s3667_s9, %s3303_s19 }
 0x5b1   : > { %1759 = vmatpush1.bf16.msra.mxu1 %v2883_v6 }
 0x5b2   : > { %2717 = vmatpush3.bf16.msra.mxu0 %v2874_v17  ;;  %1760 = vmatprep.subr.bf16.mxu1 %v2888_v7 }
 0x5b3   : > { %2718 = vmatprep.subr.bf16.mxu0 %v3069_v29 }
 0x5b5   : > { %1761 = vmatpush1.bf16.msra.mxu1 %v2886_v8 }
 0x5b6   : > { %2719 = vmatpush3.bf16.msra.mxu0 %v2875_v18  ;;  %1762 = vmatprep.subr.bf16.mxu1 %v2891_v9 }
 0x5b7   : > { %2720 = vmatprep.subr.bf16.mxu0 %v3069_v29 }
 0x5b9   : > { %1763 = vmatpush1.bf16.msra.mxu1 %v2889_v10 }
 0x5ba   : > { %2721 = vmatpush3.bf16.msra.mxu0 %v2876_v21  ;;  %1764 = vmatprep.subr.bf16.mxu1 %v2894_v11 }
 0x5bd   : > { %1765 = vmatpush1.bf16.msra.mxu1 %v2892_v12 }
 0x5be   : > { %1766 = vmatprep.subr.bf16.mxu1 %v2897_v13 }
 0x5c1   : > { %1767 = vmatpush1.bf16.msra.mxu1 %v2895_v14 }
 0x5c2   : > { %1768 = vmatprep.subr.bf16.mxu1 %v2900_v15 }
 0x5c5   : > { %1769 = vmatpush1.bf16.msra.mxu1 %v2898_v28 }
 0x632   : > { %v1422_v19 = vpop.xlane.xlu0 %1421 }
 0x633   : > { %2925 = vrcp.f32 %v1422_v19 }
 0x634   : > { %v1425_v20 = vpop.xlane.xlu1 %1424 }
 0x635   : > { %2927 = vrcp.f32 %v1425_v20 }
 0x638   : > { %v1297_v33 = vpop.xlane.xlu1 %1296 }
 0x639   : > { %2929 = vrcp.f32 %v1297_v33 }
 0x63c   : > { %v1300_v29 = vpop.xlane.xlu1 %1299 }
 0x63d   : > { %v2926_v23 = vpop.eup %2925  ;;  %2931 = vrcp.f32 %v1300_v29 }
 0x63f   : > { %v2928_v25 = vpop.eup %2927 }
 0x643   : > { %v2930_v34 = vpop.eup %2929 }
 0x644   : > { %v1349_v37 = vmul.f32 %v2930_v34, %v3470_v43  ;;  %v2901_v34 = vld [vmem:[%s3738_s1 + $0x40] sm:$0xff]  }
 0x645   : > { %2631 = vmatprep.subr.bf16.mxu0 %v2901_v34 }
 0x647   : > { %v2932_v35 = vpop.eup %2931 }
 0x648   : > { %v1350_v38 = vmul.f32 %v2932_v35, %v3472_v45  ;;  %v2902_v35 = vld [vmem:[%s3738_s1] sm:$0xff]  }
 0x67b   : > { %v1468_v22 = vpop.f32.mrb[16].mxu1 }
 0x67c   : > { %v2704_v24 = vpop.f32.mrb[17].mxu1  ;;  %v1477_v27 = vmul.f32 %v2926_v23, %v1468_v22 }
 0x67d   : > { %v1471_v26 = vpop.f32.mrb[18].mxu1  ;;  %v2547_v24 = vld [vmem:[%s3739_s5] ss:$0 sm:$0xff] }
 0x67e   : > { %v1478_v30 = vmul.f32 %v2928_v25, %v1471_v26  ;;  %v2705_v31 = vpop.f32.mrb[19].mxu1 }
 0x680   : > { %v2832_v32 = vpack.i.bf16 %v1478_v30, %v1477_v27  ;;  %v2548_v30 = vld [vmem:[%s3740_s18] ss:$0 sm:$0xff] }
 0x682   : > { %2833 = vrot.lane.b32.xlu1 %v2832_v32, %s3071_s30 }
 0x6f4   : > { %v2834_v36 = vpop.permute.xlu1 %2833 }
 0x6f5   : > { %v2836_v39 = vunpack.i.h.bf16 %v2834_v36  ;;  %v2835_v40 = vunpack.i.l.bf16 %v2834_v36  ;;  %v2903_v36 = vld [vmem:[%s3738_s1 + $0x48] sm:$0xff]  }
 0x6f7   : > { %v1488_v41 = vsel %vm1224_vm1, %v1350_v38, %v2836_v39  ;;  %v1487_v42 = vsel %vm1224_vm1, %v1349_v37, %v2835_v40  ;;  %v2904_v37 = vld [vmem:[%s3738_s1 + $0x8] sm:$0xff]   ;;  %v2905_v38 = vld [vmem:[%s3738_s1 + $0x50] sm:$0xff]   ;;  %v2907_v40 = vld [vmem:[%s3738_s1 + $0x58] sm:$0xff]  }
 0x6f8   : > { %v1489_v44 = vpack.c.bf16 %v1488_v41, %v1487_v42  ;;  %v2906_v39 = vld [vmem:[%s3738_s1 + $0x10] sm:$0xff]   ;;  %v2908_v41 = vld [vmem:[%s3738_s1 + $0x18] sm:$0xff]   ;;  %v2909_v42 = vld [vmem:[%s3738_s1 + $0x60] sm:$0xff]  }
 0x6fa   : > { %2723 = vmatmul.mubr.bf16.vlgmr.msra.gmra.mrb[4].mxu0 %v1489_v44  ;;  %v2910_v44 = vld [vmem:[%s3738_s1 + $0x20] sm:$0xff]  }
 0x6fb   : > { %2632 = vmatpush3.bf16.msra.mxu0 %v2902_v35 }
 0x6fc   : > { %2633 = vmatprep.subr.bf16.mxu0 %v2903_v36 }
 0x6ff   : > { %2634 = vmatpush3.bf16.msra.mxu0 %v2904_v37 }
 0x700   : > { %2635 = vmatprep.subr.bf16.mxu0 %v2905_v38 }
 0x703   : > { %2636 = vmatpush3.bf16.msra.mxu0 %v2906_v39  ;;  %v2565_v39 = vld [vmem:[%s890_s2] ss:$0 sm:$0xff] }
 0x704   : > { %2637 = vmatprep.subr.bf16.mxu0 %v2907_v40 }
 0x707   : > { %2638 = vmatpush3.bf16.msra.mxu0 %v2908_v41 }
 0x708   : > { %2639 = vmatprep.subr.bf16.mxu0 %v2909_v42 }
 0x70b   : > { %2640 = vmatpush3.bf16.msra.mxu0 %v2910_v44 }
 0x7cd   : > { %v1595_v43 = vpop.f32.mrb[4].mxu0 }
 0x7ce   : > { %v1596_v47 = vadd.f32 %v2538_v46, %v1595_v43  ;;  %v2724_v45 = vpop.f32.mrb[5].mxu0  ;;  %v2912_v43 = vld [vmem:[%s3738_s1 + $0x28] sm:$0xff]  }
 0x7cf   : > { %v1598_v48 = vpop.f32.mrb[6].mxu0  ;;  %v2914_v45 = vld [vmem:[%s3738_s1 + $0x30] sm:$0xff]  }
 0x7d0   : > { %v1599_v51 = vadd.f32 %v2538_v46, %v1598_v48  ;;  %v2725_v52 = vpop.f32.mrb[7].mxu0  ;;  %v1602_v53 = vadd.f32 %v1596_v47, %v3415_v49  ;;  %v2911_v46 = vld [vmem:[%s3738_s1 + $0x68] sm:$0xff]   ;;  %v2913_v47 = vld [vmem:[%s3738_s1 + $0x70] sm:$0xff]   ;;  %v2915_v48 = vld [vmem:[%s3738_s1 + $0x78] sm:$0xff]  }
 0x7d1   : > { %2641 = vmatprep.subr.bf16.mxu0 %v2911_v46  ;;  %v1662_v52 = vld [vmem:[%s3358_s26] sm:$0x3] }
 0x7d2   : > { %1606 = vadd.xlane.f32.xlu0 %v1602_v53  ;;  %v1603_v54 = vadd.f32 %v1599_v51, %v3417_v50  ;;  %2642 = vmatpush3.bf16.msra.mxu0 %v2912_v43  ;;  %v2916_v51 = vld [vmem:[%s3738_s1 + $0x38] sm:$0xff]  }
 0x7d3   : > { %2643 = vmatprep.subr.bf16.mxu0 %v2913_v47 }
 0x7d6   : > { %1608 = vadd.xlane.f32.xlu0 %v1603_v54  ;;  %2644 = vmatpush3.bf16.msra.mxu0 %v2914_v45 }
 0x7d7   : > { %2645 = vmatprep.subr.bf16.mxu0 %v2915_v48 }
 0x7da   : > { %2646 = vmatpush3.bf16.msra.mxu0 %v2916_v51 }
 0x85f   : > { %v1607_v63 = vpop.xlane.xlu0 %1606 }
 0x860   : > { %v1611_v0 = vmul.f32 0.0078125, %v1607_v63 }
 0x862   : > { %v1613_v1 = vsub.f32 %v1602_v53, %v1611_v0  ;;  %v1667_v53 = vrot.slane %v1662_v52, %v996_v57 }
 0x863   : > { %v1609_v49 = vpop.xlane.xlu0 %1608 }
 0x864   : > { %v1612_v50 = vmul.f32 0.0078125, %v1609_v49  ;;  %v1615_v2 = vmul.f32 %v1613_v1, %v1613_v1 }
 0x866   : > { %v1614_v3 = vsub.f32 %v1603_v54, %v1612_v50  ;;  %1617 = vadd.xlane.f32.xlu0 %v1615_v2  ;;  %v1671_v54 = vrot.slane %v1662_v52, %v1000_v59 }
 0x868   : > { %v1616_v4 = vmul.f32 %v1614_v3, %v1614_v3 }
 0x86a   : > { %1619 = vadd.xlane.f32.xlu1 %v1616_v4 }
 0x8f3   : > { %v1618_v16 = vpop.xlane.xlu0 %1617 }
 0x8f4   : > { %v1621_v17 = vmul.f32 0.0078125, %v1618_v16 }
 0x8f6   : > { %v1623_v18 = vadd.f32 1e-12, %v1621_v17 }
 0x8f7   : > { %v1620_v19 = vpop.xlane.xlu1 %1619 }
 0x8f8   : > { %2933 = vrsqrt.f32 %v1623_v18  ;;  %v1622_v20 = vmul.f32 0.0078125, %v1620_v19 }
 0x8fa   : > { %v1624_v21 = vadd.f32 1e-12, %v1622_v20 }
 0x8fc   : > { %2935 = vrsqrt.f32 %v1624_v21 }
 0x902   : > { %v2934_v22 = vpop.eup %2933 }
 0x903   : > { %v1627_v23 = vmul.f32 %v2934_v22, %v1613_v1 }
 0x905   : > { %v1635_v27 = vmul.f32 %v2547_v24, %v1627_v23 }
 0x906   : > { %v2936_v25 = vpop.eup %2935 }
 0x907   : > { %v1628_v26 = vmul.f32 %v2936_v25, %v1614_v3  ;;  %v3536_v32 = vadd.f32 %v2548_v30, %v1635_v27 }
 0x909   : > { %v1636_v31 = vmul.f32 %v2547_v24, %v1628_v26 }
 0x90b   : > { %v3538_v33 = vadd.f32 %v2548_v30, %v1636_v31 }
 0x90d   : > { %v1645_v29 = vpack.c.bf16 %v3538_v33, %v3536_v32 }
 0x90f   : > { %1787 = vmatmul.mubr.bf16.vlgmr.msra.gmra.mrb[20].mxu1 %v1645_v29 }
 0x9e2   : > { %v1788_v58 = vpop.f32.mrb[20].mxu1 }
 0x9e3   : > { %v1789_v60 = vadd.f32 %v1788_v58, %v1667_v53  ;;  %v1790_v61 = vpop.f32.mrb[21].mxu1 }
 0x9e4   : > { %v1791_v62 = vadd.f32 %v1790_v61, %v1671_v54  ;;  %v1792_v63 = vpop.f32.mrb[22].mxu1 }
 0x9e5   : > { %v1801_v0 = vmul.f32 0.044715, %v1789_v60  ;;  %v1793_v1 = vadd.f32 %v1792_v63, %v1667_v53  ;;  %v1794_v49 = vpop.f32.mrb[23].mxu1  ;;  %v1797_v23 = vmul.f32 0.5, %v1789_v60 }
 0x9e6   : > { %v1802_v50 = vmul.f32 0.044715, %v1791_v62  ;;  %v1795_v2 = vadd.f32 %v1794_v49, %v1671_v54  ;;  %v1798_v26 = vmul.f32 0.5, %v1791_v62 }
 0x9e7   : > { %v1805_v3 = vmul.f32 %v1801_v0, %v1789_v60  ;;  %v1803_v4 = vmul.f32 0.044715, %v1793_v1  ;;  %v1799_v24 = vmul.f32 0.5, %v1793_v1 }
 0x9e8   : > { %v1806_v5 = vmul.f32 %v1802_v50, %v1791_v62  ;;  %v1804_v6 = vmul.f32 0.044715, %v1795_v2  ;;  %v1800_v27 = vmul.f32 0.5, %v1795_v2 }
 0x9e9   : > { %v1809_v7 = vmul.f32 %v1805_v3, %v1789_v60  ;;  %v1807_v8 = vmul.f32 %v1803_v4, %v1793_v1  ;;  %v2583_v4 = vld [vmem:[%s896_s23] ss:$0 sm:$0xff] }
 0x9ea   : > { %v1810_v57 = vmul.f32 %v1806_v5, %v1791_v62  ;;  %v1808_v9 = vmul.f32 %v1804_v6, %v1795_v2 }
 0x9eb   : > { %v1813_v56 = vadd.f32 %v1809_v7, %v1789_v60  ;;  %v1811_v59 = vmul.f32 %v1807_v8, %v1793_v1 }
 0x9ec   : > { %v1812_v10 = vmul.f32 %v1808_v9, %v1795_v2  ;;  %v1814_v11 = vadd.f32 %v1810_v57, %v1791_v62 }
 0x9ed   : > { %v1817_v12 = vmul.f32 0.7978846, %v1813_v56  ;;  %v1815_v13 = vadd.f32 %v1811_v59, %v1793_v1  ;;  %v3072_v59 = vmov (!%p2584_p6), 0.0  }
 0x9ee   : > { %v1816_v14 = vadd.f32 %v1812_v10, %v1795_v2  ;;  %v1818_v15 = vmul.f32 0.7978846, %v1814_v11  ;;  %v2582_v2 = vld [vmem:[%s893_s22] ss:$0 sm:$0xff]  ;;  %s3742_s22 = sld [smem:[#allocation29_spill]] (!%p2584_p6)  ;;  %2726 = vmatprep.subr.bf16.mxu0 (!%p2584_p6), %v3072_v59  ;;  %v3074_v11 = vmov (!%p2584_p6), 0  }
 0x9ef   : > { %2937 = vtanh.f32 %v1817_v12  ;;  %v1819_v28 = vmul.f32 0.7978846, %v1815_v13  ;;  %2949 = vset.pattern.permute.xlu1 (!%p2584_p6), %v3074_v11  ;;  %2950 = vset.pattern.permute.xlu0 (!%p2584_p6), %v3074_v11  ;;  %v3595_v13 = vld [vmem:[%s3744_s4] sm:$0xff] (!%p2584_p6) }
 0x9f0   : > { %v1820_v16 = vmul.f32 0.7978846, %v1816_v14  ;;  %2939 = vtanh.f32 %v1818_v15  ;;  %2205 = vperm.xlu1 (!%p2584_p6), %2949, %v3595_v13   ;;  %v3602_v15 = vld [vmem:[%s3744_s4 + $0x8] sm:$0xff] (!%p2584_p6)  ;;  %vm2176_vm6 = vcmp.ne.s32.totalorder (!%p2584_p6), %v3595_v13, 4294967196 }
 0x9f1   : > { %2941 = vtanh.f32 %v1819_v28  ;;  %vm2177_vm7 = vcmp.ne.s32.totalorder (!%p2584_p6), %v3602_v15, 4294967196 }
 0x9f2   : > { %2943 = vtanh.f32 %v1820_v16 }
 0x9f4   : > { %s3743_s27 = smov (!%p2584_p6), %s3742_s22  ;;  %v2951_v56 = vld [vmem:[%s3742_s22] sm:$0xff] (!%p2584_p6)   ;;  %2208 = vperm.xlu1 (!%p2584_p6), %2949, %v3602_v15  }
 0x9f5   : > { %v2952_v10 = vld [vmem:[%s3743_s27 + $0x8] sm:$0xff] (!%p2584_p6)   ;;  %v2953_v12 = vld [vmem:[%s3743_s27 + $0x10] sm:$0xff] (!%p2584_p6)   ;;  %v2954_v14 = vld [vmem:[%s3743_s27 + $0x18] sm:$0xff] (!%p2584_p6)  }
 0x9f6   : > { %v2955_v28 = vld [vmem:[%s3743_s27 + $0x20] sm:$0xff] (!%p2584_p6)   ;;  %v2956_v16 = vld [vmem:[%s3743_s27 + $0x28] sm:$0xff] (!%p2584_p6)  }
 0x9f9   : > { %v2938_v17 = vpop.eup %2937 }
 0x9fa   : > { %v2940_v18 = vpop.eup %2939  ;;  %v1825_v19 = vadd.f32 1.0, %v2938_v17  ;;  %v2957_v17 = vld [vmem:[%s3743_s27 + $0x30] sm:$0xff] (!%p2584_p6)  }
 0x9fb   : > { %v2942_v20 = vpop.eup %2941  ;;  %v1826_v21 = vadd.f32 1.0, %v2940_v18  ;;  %v2958_v18 = vld [vmem:[%s3743_s27 + $0x38] sm:$0xff] (!%p2584_p6)  }
 0x9fc   : > { %v2944_v22 = vpop.eup %2943  ;;  %v1827_v25 = vadd.f32 1.0, %v2942_v20  ;;  %v1829_v31 = vmul.f32 %v1825_v19, %v1797_v23  ;;  %v2585_v20 = vld [vmem:[%s3745_s20] ss:$0 sm:$0xff] (!%p2584_p6) }
 0x9fd   : > { %v1828_v30 = vadd.f32 1.0, %v2944_v22  ;;  %v1830_v34 = vmul.f32 %v1826_v21, %v1798_v26 }
 0x9fe   : > { %v1831_v29 = vmul.f32 %v1827_v25, %v1799_v24 }
 0x9ff   : > { %v1832_v35 = vmul.f32 %v1828_v30, %v1800_v27 }
 0xa00   : > { %v1833_v36 = vpack.c.bf16 %v1831_v29, %v1829_v31 }
 0xa01   : > { %v1834_v37 = vpack.c.bf16 %v1832_v35, %v1830_v34 }
 0xa03   : > { %2002 = vmatprep.mubr.bf16.mxu0 %v1834_v37  ;;  %v2203_v37 = vand.u32 (!%p2584_p6), 127, %v994_v55 }
 0xa04   : > { %2003 = vmatmul.mubr.bf16.vlgmr.msra.gmra.mrb[8].mxu0 %v1833_v36 }
 0xa05   : > { %2727 = vmatpush3.bf16.msra.mxu0 (!%p2584_p6), %v2951_v56  ;;  %2742 = vmatprep.mubr.msk.bf16.mxu0 (!%p2584_p6), %vm3073_vm3, %v3072_v59 }
 0xa06   : > { %2728 = vmatprep.subr.bf16.mxu0 (!%p2584_p6), %v3072_v59 }
 0xa09   : > { %2729 = vmatpush3.bf16.msra.mxu0 (!%p2584_p6), %v2952_v10 }
 0xa0a   : > { %2730 = vmatprep.subr.bf16.mxu0 (!%p2584_p6), %v3072_v59 }
 0xa0d   : > { %2731 = vmatpush3.bf16.msra.mxu0 (!%p2584_p6), %v2953_v12 }
 0xa0e   : > { %2732 = vmatprep.subr.bf16.mxu0 (!%p2584_p6), %v3072_v59 }
 0xa11   : > { %2733 = vmatpush3.bf16.msra.mxu0 (!%p2584_p6), %v2954_v14 }
 0xa12   : > { %2734 = vmatprep.subr.bf16.mxu0 (!%p2584_p6), %v3072_v59 }
 0xa15   : > { %2735 = vmatpush3.bf16.msra.mxu0 (!%p2584_p6), %v2955_v28 }
 0xa16   : > { %2736 = vmatprep.subr.bf16.mxu0 (!%p2584_p6), %v3072_v59 }
 0xa19   : > { %2737 = vmatpush3.bf16.msra.mxu0 (!%p2584_p6), %v2956_v16 }
 0xa1a   : > { %2738 = vmatprep.subr.bf16.mxu0 (!%p2584_p6), %v3072_v59 }
 0xa1d   : > { %2739 = vmatpush3.bf16.msra.mxu0 (!%p2584_p6), %v2957_v17 }
 0xa1e   : > { %2740 = vmatprep.subr.bf16.mxu0 (!%p2584_p6), %v3072_v59 }
 0xa21   : > { %2741 = vmatpush3.bf16.msra.mxu0 (!%p2584_p6), %v2958_v18 }
 0xa6f   : > { %v2206_v36 = vpop.permute.xlu1 (!%p2584_p6), %2205 }
 0xa70   : > { %vm2210_vm4 = vcmp.eq.s32.totalorder (!%p2584_p6), %v2203_v37, %v2206_v36 }
 0xad7   : > { %v2647_v38 = vpop.f32.mrb[8].mxu0 }
 0xad8   : > { %v2648_v40 = vpop.f32.mrb[9].mxu0 }
 0xad9   : > { %v2649_v41 = vadd.f32 %v2648_v40, %v2647_v38  ;;  %v2650_v42 = vpop.f32.mrb[10].mxu0 }
 0xada   : > { %v2651_v44 = vpop.f32.mrb[11].mxu0 }
 0xadb   : > { %v2005_v46 = vadd.f32 %v2649_v41, %v2565_v39  ;;  %v2652_v43 = vadd.f32 %v2651_v44, %v2650_v42 }
 0xadd   : > { %v2008_v47 = vadd.f32 %v2652_v43, %v2565_v39  ;;  %v2011_v45 = vadd.f32 %v2005_v46, %v3536_v32  ;;  %v2209_v39 = vpop.permute.xlu1 (!%p2584_p6), %2208 }
 0xade   : > { %vm2211_vm5 = vcmp.eq.s32.totalorder (!%p2584_p6), %v2203_v37, %v2209_v39 }
 0xadf   : > { %2015 = vadd.xlane.f32.xlu0 %v2011_v45  ;;  %v2012_v48 = vadd.f32 %v2008_v47, %v3538_v33 }
 0xae3   : > { %2017 = vadd.xlane.f32.xlu0 %v2012_v48 }
 0xb6c   : > { %v2016_v51 = vpop.xlane.xlu0 %2015 }
 0xb6d   : > { %v2019_v52 = vmul.f32 0.0078125, %v2016_v51  ;;  %v2594_v51 = vsel (!%p2584_p6), %vm2176_vm6, 1.0, %v3072_v59 }
 0xb6f   : > { %v2021_v53 = vsub.f32 %v2011_v45, %v2019_v52 }
 0xb70   : > { %v2018_v54 = vpop.xlane.xlu0 %2017 }
 0xb71   : > { %v2020_v58 = vmul.f32 0.0078125, %v2018_v54  ;;  %v2023_v60 = vmul.f32 %v2021_v53, %v2021_v53 }
 0xb73   : > { %v2022_v61 = vsub.f32 %v2012_v48, %v2020_v58  ;;  %2025 = vadd.xlane.f32.xlu0 %v2023_v60  ;;  %v2595_v60 = vsel (!%p2584_p6), %vm2177_vm7, 1.0, %v3072_v59 }
 0xb75   : > { %v2024_v62 = vmul.f32 %v2022_v61, %v2022_v61 }
 0xb77   : > { %2027 = vadd.xlane.f32.xlu0 %v2024_v62 }
 0xc00   : > { %v2026_v63 = vpop.xlane.xlu0 %2025 }
 0xc01   : > { %v2029_v0 = vmul.f32 0.0078125, %v2026_v63 }
 0xc03   : > { %v2031_v1 = vadd.f32 1e-12, %v2029_v0 }
 0xc04   : > { %v2028_v32 = vpop.xlane.xlu0 %2027 }
 0xc05   : > { %2945 = vrsqrt.f32 %v2031_v1  ;;  %v2030_v49 = vmul.f32 0.0078125, %v2028_v32 }
 0xc07   : > { %v2032_v33 = vadd.f32 1e-12, %v2030_v49 }
 0xc09   : > { %2947 = vrsqrt.f32 %v2032_v33 }
 0xc0f   : > { %v2946_v50 = vpop.eup %2945 }
 0xc10   : > { %v2035_v3 = vmul.f32 %v2946_v50, %v2021_v53 }
 0xc12   : > { %v2043_v5 = vmul.f32 %v2582_v2, %v2035_v3 }
 0xc13   : > { %v2948_v6 = vpop.eup %2947 }
 0xc14   : > { %v2051_v7 = vadd.f32 %v2583_v4, %v2043_v5  ;;  %v2036_v8 = vmul.f32 %v2948_v6, %v2022_v61  ;;  %2058 = sbr.rel (%p2584_p6) target bundleno = 3637 (0xe35), region = 108 }
 0xc16   : > { %2053 = vst [vmem:[#allocation2] sm:$0xff] %v2051_v7  ;;  %v2044_v57 = vmul.f32 %v2582_v2, %v2036_v8 }
 0xc18   : > { %v2052_v9 = vadd.f32 %v2583_v4, %v2044_v57 }
 0xc1a   : > { %2054 = vst [vmem:[#allocation2 + $0x8] sm:$0xff] %v2052_v9  ;;  %v2059_v19 = vpack.c.bf16 (!%p2584_p6), %v2052_v9, %v2051_v7 }
 0xc1c   : > { %2743 = vmatmul.mubr.bf16.vlgmr.msra.gmra.mrb[0].mxu0 %v2059_v19 }
 0xcef   : > { %v2165_v21 = vpop.f32.mrb[0].mxu0 }
 0xcf0   : > { %v2166_v22 = vadd.f32 %v2585_v20, %v2165_v21  ;;  %v2744_v23 = vpop.f32.mrb[1].mxu0 }
 0xcf1   : > { %v2168_v24 = vpop.f32.mrb[2].mxu0 }
 0xcf2   : > { %2172 = vst [vmem:[%s3375_s11] sm:$0xff] %v2166_v22  ;;  %v2169_v25 = vadd.f32 %v2585_v20, %v2168_v24  ;;  %2182 = vmax.xlane.f32.xlu0 %v2166_v22  ;;  %v2745_v26 = vpop.f32.mrb[3].mxu0  ;;  %v2212_v41 = vsel %vm2210_vm4, %v2166_v22, 0.0 }
 0xcf4   : > { %2173 = vst [vmem:[%s3375_s11 + $0x8] sm:$0xff] %v2169_v25  ;;  %v2213_v42 = vsel %vm2211_vm5, %v2169_v25, 0.0 }
 0xcf6   : > { %2184 = vmax.xlane.f32.xlu0 %v2169_v25 }
 0xd7f   : > { %v2183_v27 = vpop.xlane.xlu0 %2182 }
 0xd80   : > { %v2186_v30 = vsub.f32 %v2166_v22, %v2183_v27 }
 0xd82   : > { %v2188_v31 = vmul.f32 1.442695, %v2186_v30 }
 0xd83   : > { %v2185_v29 = vpop.xlane.xlu0 %2184 }
 0xd84   : > { %2959 = vpow2.f32 %v2188_v31  ;;  %v2187_v34 = vsub.f32 %v2169_v25, %v2185_v29 }
 0xd86   : > { %v2190_v35 = vmul.f32 1.442695, %v2187_v34 }
 0xd88   : > { %2961 = vpow2.f32 %v2190_v35 }
 0xd8e   : > { %v2960_v38 = vpop.eup %2959 }
 0xd8f   : > { %2192 = vadd.xlane.f32.xlu0 %v2960_v38 }
 0xd92   : > { %v2962_v40 = vpop.eup %2961 }
 0xd93   : > { %2214 = vadd.xlane.f32.xlu0 %v2212_v41  ;;  %2194 = vadd.xlane.f32.xlu1 %v2962_v40 }
 0xd97   : > { %2216 = vadd.xlane.f32.xlu0 %v2213_v42 }
 0xe1c   : > { %v2193_v44 = vpop.xlane.xlu0 %2192 }
 0xe1d   : > { %2963 = vlog2.f32 %v2193_v44 }
 0xe20   : > { %v2195_v46 = vpop.xlane.xlu1 %2194  ;;  %v2215_v47 = vpop.xlane.xlu0 %2214 }
 0xe21   : > { %2965 = vlog2.f32 %v2195_v46 }
 0xe24   : > { %v2217_v61 = vpop.xlane.xlu0 %2216 }
 0xe27   : > { %v2964_v43 = vpop.eup %2963 }
 0xe28   : > { %v2197_v55 = vmul.f32 0.6931472, %v2964_v43 }
 0xe2a   : > { %v2200_v45 = vadd.f32 %v2197_v55, %v2183_v27 }
 0xe2b   : > { %v2966_v48 = vpop.eup %2965 }
 0xe2c   : > { %v2199_v52 = vmul.f32 0.6931472, %v2966_v48  ;;  %v2218_v53 = vsub.f32 %v2200_v45, %v2215_v47 }
 0xe2e   : > { %v2220_v54 = vmul.f32 %v2594_v51, %v2218_v53  ;;  %v2201_v58 = vadd.f32 %v2199_v52, %v2185_v29 }
 0xe30   : > { %2223 = vst.msk [vmem:[%s3380_s12] sm:$0xff] %vm2222_vm8, %v2220_v54  ;;  %v2219_v62 = vsub.f32 %v2201_v58, %v2217_v61 }
 0xe32   : > { %v2221_v63 = vmul.f32 %v2595_v60, %v2219_v62 }
 0xe34   : > { %2224 = vst.msk [vmem:[%s3380_s12 + $0x8] sm:$0xff] %vm2222_vm8, %v2221_v63 }
 0xe35 PF: > { %s3746_s11 = sld [smem:[#allocation11_spill]]  ;;  %s3747_s1 = sld [smem:[#allocation6_spill]] }
 0xe36   : > { %s3748_s22 = sld [smem:[#allocation7_spill]]  ;;  %s3749_s23 = sld [smem:[#allocation14_spill]] }
 0xe37   : > { %s3750_s24 = sld [smem:[#allocation9_spill]]  ;;  %s3751_s2 = sld [smem:[#allocation10_spill]] }
 0xe38   : > { %s3752_s25 = sld [smem:[#allocation12_spill]]  ;;  %s3753_s3 = sld [smem:[#allocation13_spill]] }
 0xe3b   : > { %s34_s26 = sadd.s32 1, %s3746_s11  }
 0xe3c   : > { %p31_p7 = scmp.ge.s32.totalorder %s34_s26, 6  }
 0xe3e   :  { %33 = sbr.rel (!%p31_p7) target bundleno = 21 (0x15), region = 198 }
 0xe45   :  { %2262 = vsyncpa [#allocation4], 1 }
 0xe46   :  { %2264 = vsyncpa [#allocation4 + $0x1], 1 }

</bundles_post_ra>
